<compile_context>
chip_gen: v6e
topology: v6e:2x2x1
jax: 0.10.0
libtpu: 0.0.40
codegen_flags: <defaults>
</compile_context>

<pallas_src>
import functools
import math

import jax
import jax.numpy as jnp
from jax.experimental import pallas as pl
from jax.experimental.pallas import tpu as pltpu  # noqa: F401

# ----------------------------------------------------------------------------
# Config (toy BERT)
# ----------------------------------------------------------------------------
VOCAB = 100
MAX_POS = 16
TYPE_VOCAB = 2
HIDDEN = 32
NUM_LAYERS = 2
NUM_HEADS = 2
HEAD_DIM = HIDDEN // NUM_HEADS
INTERMEDIATE = 4 * HIDDEN
NUM_LABELS = 2
LN_EPS = 1e-12


def _full_spec(shape):
    # Whole-array block (legal: each block dim equals the full array dim).
    return pl.BlockSpec(shape, lambda *_: (0,) * len(shape))


# ----------------------------------------------------------------------------
# Single fused Pallas kernel: embeddings-LN -> encoder layers -> pooler -> logits
# ----------------------------------------------------------------------------
def _bert_kernel(x_ref, eg_ref, eb_ref,
                 qkvw_ref, qkvb_ref, ow_ref, ob_ref, l1g_ref, l1b_ref,
                 f1w_ref, f1b_ref, f2w_ref, f2b_ref, l2g_ref, l2b_ref,
                 pw_ref, pb_ref, cw_ref, cb_ref,
                 logits_ref,
                 *, batch, seq, num_layers, num_heads, head_dim, eps):
    hidden = num_heads * head_dim
    scale = 1.0 / math.sqrt(head_dim)
    inv_sqrt2 = 1.0 / math.sqrt(2.0)

    def layer_norm(y, g, b):
        mu = jnp.mean(y, axis=-1, keepdims=True)
        d = y - mu
        var = jnp.mean(d * d, axis=-1, keepdims=True)
        return d * jax.lax.rsqrt(var + eps) * g + b

    # Embedding LayerNorm.
    x = layer_norm(x_ref[...], eg_ref[...], eb_ref[...])            # (B*S, H)

    for l in range(num_layers):
        # ---- self-attention block: fused QKV -> attn -> O proj -> +res -> LN
        qkv = jnp.dot(x, qkvw_ref[l],
                      preferred_element_type=jnp.float32) + qkvb_ref[l]  # (B*S, 3H)
        rows = []
        for b in range(batch):
            r0 = b * seq
            heads = []
            for h in range(num_heads):
                c0 = h * head_dim
                q = qkv[r0:r0 + seq, c0:c0 + head_dim]                       # (S, dh)
                k = qkv[r0:r0 + seq, hidden + c0:hidden + c0 + head_dim]
                v = qkv[r0:r0 + seq, 2 * hidden + c0:2 * hidden + c0 + head_dim]
                # q @ k^T expressed as a contraction (no materialized transpose)
                s = jax.lax.dot_general(q, k, (((1,), (1,)), ((), ())),
                                        preferred_element_type=jnp.float32) * scale
                m = jnp.max(s, axis=-1, keepdims=True)
                p = jnp.exp(s - m)
                p = p * pl.reciprocal(jnp.sum(p, axis=-1, keepdims=True), approx=True)
                heads.append(jnp.dot(p, v, preferred_element_type=jnp.float32))
            rows.append(jnp.concatenate(heads, axis=-1))              # (S, H)
        ctx = jnp.concatenate(rows, axis=0)                           # (B*S, H)
        attn_out = jnp.dot(ctx, ow_ref[l],
                           preferred_element_type=jnp.float32) + ob_ref[l]
        x = layer_norm(attn_out + x, l1g_ref[l], l1b_ref[l])

        # ---- feed-forward block: FF1(gelu) -> FF2 -> +res -> LN -------------
        h1 = jnp.dot(x, f1w_ref[l],
                     preferred_element_type=jnp.float32) + f1b_ref[l]
        h1 = 0.5 * h1 * (1.0 + jax.lax.erf(h1 * inv_sqrt2))           # exact-erf GELU
        ff = jnp.dot(h1, f2w_ref[l],
                     preferred_element_type=jnp.float32) + f2b_ref[l]
        x = layer_norm(ff + x, l2g_ref[l], l2b_ref[l])

    # ---- pooler (tanh dense on CLS tokens) + classifier head ----------------
    cls_rows = jnp.concatenate([x[b * seq:b * seq + 1, :] for b in range(batch)],
                               axis=0)                                # (B, H)
    pooled = jnp.tanh(jnp.dot(cls_rows, pw_ref[...],
                              preferred_element_type=jnp.float32) + pb_ref[...])
    logits = jnp.dot(pooled, cw_ref[...],
                     preferred_element_type=jnp.float32) + cb_ref[...]
    logits_ref[...] = logits.astype(logits_ref.dtype)


# ----------------------------------------------------------------------------
# Deterministic parameter init (stacked per-layer, QKV fused)
# ----------------------------------------------------------------------------
def init_params(key):
    std = 0.02
    ks = iter(jax.random.split(key, 256))

    def nrm(shape):
        return (std * jax.random.normal(next(ks), shape)).astype(jnp.float32)

    zeros = lambda shape: jnp.zeros(shape, jnp.float32)
    ones = lambda shape: jnp.ones(shape, jnp.float32)

    qkv_w, qkv_b, o_w, o_b = [], [], [], []
    ln1_g, ln1_b, ff1_w, ff1_b, ff2_w, ff2_b, ln2_g, ln2_b = ([] for _ in range(8))
    for _ in range(NUM_LAYERS):
        q_w, k_w, v_w = nrm((HIDDEN, HIDDEN)), nrm((HIDDEN, HIDDEN)), nrm((HIDDEN, HIDDEN))
        qkv_w.append(jnp.concatenate([q_w, k_w, v_w], axis=1))        # fused (H, 3H)
        qkv_b.append(zeros((1, 3 * HIDDEN)))
        o_w.append(nrm((HIDDEN, HIDDEN))); o_b.append(zeros((1, HIDDEN)))
        ln1_g.append(ones((1, HIDDEN)));   ln1_b.append(zeros((1, HIDDEN)))
        ff1_w.append(nrm((HIDDEN, INTERMEDIATE))); ff1_b.append(zeros((1, INTERMEDIATE)))
        ff2_w.append(nrm((INTERMEDIATE, HIDDEN))); ff2_b.append(zeros((1, HIDDEN)))
        ln2_g.append(ones((1, HIDDEN)));   ln2_b.append(zeros((1, HIDDEN)))

    stack = lambda xs: jnp.stack(xs, axis=0)
    return {
        "word_emb": nrm((VOCAB, HIDDEN)),
        "pos_emb": nrm((MAX_POS, HIDDEN)),
        "type_emb": nrm((TYPE_VOCAB, HIDDEN)),
        "emb_ln_g": ones((1, HIDDEN)), "emb_ln_b": zeros((1, HIDDEN)),
        "qkv_w": stack(qkv_w), "qkv_b": stack(qkv_b),
        "o_w": stack(o_w), "o_b": stack(o_b),
        "ln1_g": stack(ln1_g), "ln1_b": stack(ln1_b),
        "ff1_w": stack(ff1_w), "ff1_b": stack(ff1_b),
        "ff2_w": stack(ff2_w), "ff2_b": stack(ff2_b),
        "ln2_g": stack(ln2_g), "ln2_b": stack(ln2_b),
        "pool_w": nrm((HIDDEN, HIDDEN)), "pool_b": zeros((1, HIDDEN)),
        "cls_w": nrm((HIDDEN, NUM_LABELS)), "cls_b": zeros((1, NUM_LABELS)),
    }


# ----------------------------------------------------------------------------
# Forward pass: BertForSequenceClassification(text, labels) -> (loss, logits)
# ----------------------------------------------------------------------------
def bert_forward(params, input_ids, token_type_ids, labels):
    b, s = input_ids.shape

    # Embedding gathers + sum: JAX glue (tiny, gather has no cheap Pallas win here).
    we = jnp.take(params["word_emb"], input_ids, axis=0)              # (B,S,H)
    pe = params["pos_emb"][:s][None, :, :]                            # (1,S,H)
    te = jnp.take(params["type_emb"], token_type_ids, axis=0)         # (B,S,H)
    x = (we + pe + te).reshape(b * s, HIDDEN).astype(jnp.float32)     # (B*S, H)

    args = (x, params["emb_ln_g"], params["emb_ln_b"],
            params["qkv_w"], params["qkv_b"], params["o_w"], params["o_b"],
            params["ln1_g"], params["ln1_b"],
            params["ff1_w"], params["ff1_b"], params["ff2_w"], params["ff2_b"],
            params["ln2_g"], params["ln2_b"],
            params["pool_w"], params["pool_b"], params["cls_w"], params["cls_b"])

    kernel = functools.partial(
        _bert_kernel, batch=b, seq=s, num_layers=NUM_LAYERS,
        num_heads=NUM_HEADS, head_dim=HEAD_DIM, eps=LN_EPS)

    logits = pl.pallas_call(
        kernel,
        out_shape=jax.ShapeDtypeStruct((b, NUM_LABELS), jnp.float32),
        in_specs=[_full_spec(a.shape) for a in args],
        out_specs=_full_spec((b, NUM_LABELS)),
    )(*args)

    # Cross-entropy (mean), matching nn.CrossEntropyLoss.  Tiny (B x 2) -> XLA glue.
    logp = jax.nn.log_softmax(logits.astype(jnp.float32), axis=-1)
    loss = -jnp.mean(logp[jnp.arange(b), labels])
    return loss, logits


# ----------------------------------------------------------------------------
if __name__ == "__main__":
    B, S = 2, 8
    key = jax.random.PRNGKey(0)
    k_ids, k_lbl, k_params = jax.random.split(key, 3)

    input_ids = jax.random.randint(k_ids, (B, S), 0, VOCAB, dtype=jnp.int32)
    token_type_ids = jnp.zeros((B, S), dtype=jnp.int32)
    labels = jax.random.randint(k_lbl, (B,), 0, NUM_LABELS, dtype=jnp.int32)

    params = init_params(k_params)

    loss, logits = jax.jit(bert_forward)(params, input_ids, token_type_ids, labels)
    jax.block_until_ready((loss, logits))

    assert logits.shape == (B, NUM_LABELS)
    assert loss.shape == ()
    assert bool(jnp.isfinite(loss))
    print("KERNEL_OK")
</pallas_src>

<mosaic_0001>
module attributes {stable_mosaic.version = 11 : i64} {
  func.func @_bert_kernel(%arg0: memref<16x32xf32, #tpu.memory_space<vmem>>, %arg1: memref<1x32xf32, #tpu.memory_space<vmem>>, %arg2: memref<1x32xf32, #tpu.memory_space<vmem>>, %arg3: memref<2x32x96xf32, #tpu.memory_space<vmem>>, %arg4: memref<2x1x96xf32, #tpu.memory_space<vmem>>, %arg5: memref<2x32x32xf32, #tpu.memory_space<vmem>>, %arg6: memref<2x1x32xf32, #tpu.memory_space<vmem>>, %arg7: memref<2x1x32xf32, #tpu.memory_space<vmem>>, %arg8: memref<2x1x32xf32, #tpu.memory_space<vmem>>, %arg9: memref<2x32x128xf32, #tpu.memory_space<vmem>>, %arg10: memref<2x1x128xf32, #tpu.memory_space<vmem>>, %arg11: memref<2x128x32xf32, #tpu.memory_space<vmem>>, %arg12: memref<2x1x32xf32, #tpu.memory_space<vmem>>, %arg13: memref<2x1x32xf32, #tpu.memory_space<vmem>>, %arg14: memref<2x1x32xf32, #tpu.memory_space<vmem>>, %arg15: memref<32x32xf32, #tpu.memory_space<vmem>>, %arg16: memref<1x32xf32, #tpu.memory_space<vmem>>, %arg17: memref<32x2xf32, #tpu.memory_space<vmem>>, %arg18: memref<1x2xf32, #tpu.memory_space<vmem>>, %arg19: memref<2x2xf32, #tpu.memory_space<vmem>>) attributes {dimension_semantics = [], scalar_prefetch = 0 : i64, scratch_operands = 0 : i64, tpu.core_type = #tpu.core_type<tc>} {
    %c0 = arith.constant 0 : index
    %c0_0 = arith.constant 0 : index
    %0 = vector.load %arg0[%c0, %c0_0] : memref<16x32xf32, #tpu.memory_space<vmem>>, vector<16x32xf32>
    %c0_1 = arith.constant 0 : index
    %c0_2 = arith.constant 0 : index
    %1 = vector.load %arg1[%c0_1, %c0_2] : memref<1x32xf32, #tpu.memory_space<vmem>>, vector<1x32xf32>
    %c0_3 = arith.constant 0 : index
    %c0_4 = arith.constant 0 : index
    %2 = vector.load %arg2[%c0_3, %c0_4] : memref<1x32xf32, #tpu.memory_space<vmem>>, vector<1x32xf32>
    %cst = arith.constant dense<0.000000e+00> : vector<16xf32>
    %3 = vector.multi_reduction <add>, %0, %cst [1] : vector<16x32xf32> to vector<16xf32>
    %4 = vector.shape_cast %3 : vector<16xf32> to vector<16x1xf32>
    %cst_5 = arith.constant 3.200000e+01 : f32
    %5 = vector.broadcast %cst_5 : f32 to vector<16x1xf32>
    %6 = arith.divf %4, %5 : vector<16x1xf32>
    %7 = vector.broadcast %6 : vector<16x1xf32> to vector<16x32xf32>
    %8 = arith.subf %0, %7 : vector<16x32xf32>
    %9 = arith.mulf %8, %8 : vector<16x32xf32>
    %cst_6 = arith.constant dense<0.000000e+00> : vector<16xf32>
    %10 = vector.multi_reduction <add>, %9, %cst_6 [1] : vector<16x32xf32> to vector<16xf32>
    %11 = vector.shape_cast %10 : vector<16xf32> to vector<16x1xf32>
    %cst_7 = arith.constant 3.200000e+01 : f32
    %12 = vector.broadcast %cst_7 : f32 to vector<16x1xf32>
    %13 = arith.divf %11, %12 : vector<16x1xf32>
    %cst_8 = arith.constant 9.99999996E-13 : f32
    %14 = vector.broadcast %cst_8 : f32 to vector<16x1xf32>
    %15 = arith.addf %13, %14 : vector<16x1xf32>
    %16 = math.rsqrt %15 : vector<16x1xf32>
    %17 = vector.broadcast %16 : vector<16x1xf32> to vector<16x32xf32>
    %18 = arith.mulf %8, %17 : vector<16x32xf32>
    %19 = vector.broadcast %1 : vector<1x32xf32> to vector<16x32xf32>
    %20 = arith.mulf %18, %19 : vector<16x32xf32>
    %21 = vector.broadcast %2 : vector<1x32xf32> to vector<16x32xf32>
    %22 = arith.addf %20, %21 : vector<16x32xf32>
    %c0_9 = arith.constant 0 : index
    %c0_10 = arith.constant 0 : index
    %c0_11 = arith.constant 0 : index
    %23 = vector.load %arg3[%c0_9, %c0_10, %c0_11] : memref<2x32x96xf32, #tpu.memory_space<vmem>>, vector<1x32x96xf32>
    %24 = vector.shape_cast %23 : vector<1x32x96xf32> to vector<32x96xf32>
    %cst_12 = arith.constant dense<0.000000e+00> : vector<16x96xf32>
    %25 = tpu.matmul %22, %24, %cst_12 {dimension_numbers = #tpu.dot_dimension_numbers<[1], [0], [0], [1], [0, 0, 1, 1], [], []>} : vector<16x32xf32>, vector<32x96xf32>, vector<16x96xf32> -> vector<16x96xf32>
    %c0_13 = arith.constant 0 : index
    %c0_14 = arith.constant 0 : index
    %c0_15 = arith.constant 0 : index
    %26 = vector.load %arg4[%c0_13, %c0_14, %c0_15] : memref<2x1x96xf32, #tpu.memory_space<vmem>>, vector<1x1x96xf32>
    %27 = vector.shape_cast %26 : vector<1x1x96xf32> to vector<1x96xf32>
    %28 = vector.broadcast %27 : vector<1x96xf32> to vector<16x96xf32>
    %29 = arith.addf %25, %28 : vector<16x96xf32>
    %30 = vector.extract_strided_slice %29 {offsets = [0, 0], sizes = [8, 16], strides = [1, 1]} : vector<16x96xf32> to vector<8x16xf32>
    %31 = vector.extract_strided_slice %29 {offsets = [0, 32], sizes = [8, 16], strides = [1, 1]} : vector<16x96xf32> to vector<8x16xf32>
    %32 = vector.extract_strided_slice %29 {offsets = [0, 64], sizes = [8, 16], strides = [1, 1]} : vector<16x96xf32> to vector<8x16xf32>
    %cst_16 = arith.constant dense<0.000000e+00> : vector<8x8xf32>
    %33 = tpu.matmul %30, %31, %cst_16 {dimension_numbers = #tpu.dot_dimension_numbers<[1], [1], [0], [0], [0, 0, 1, 0], [], []>} : vector<8x16xf32>, vector<8x16xf32>, vector<8x8xf32> -> vector<8x8xf32>
    %cst_17 = arith.constant 2.500000e-01 : f32
    %34 = vector.broadcast %cst_17 : f32 to vector<8x8xf32>
    %35 = arith.mulf %33, %34 : vector<8x8xf32>
    %cst_18 = arith.constant dense<0xFF800000> : vector<8xf32>
    %36 = vector.multi_reduction <maximumf>, %35, %cst_18 [1] : vector<8x8xf32> to vector<8xf32>
    %37 = vector.shape_cast %36 : vector<8xf32> to vector<8x1xf32>
    %38 = vector.broadcast %37 : vector<8x1xf32> to vector<8x8xf32>
    %39 = arith.subf %35, %38 : vector<8x8xf32>
    %40 = math.exp %39 : vector<8x8xf32>
    %cst_19 = arith.constant dense<0.000000e+00> : vector<8xf32>
    %41 = vector.multi_reduction <add>, %40, %cst_19 [1] : vector<8x8xf32> to vector<8xf32>
    %42 = vector.shape_cast %41 : vector<8xf32> to vector<8x1xf32>
    %43 = tpu.reciprocal %42 {approx = true} : vector<8x1xf32> -> vector<8x1xf32>
    %44 = vector.broadcast %43 : vector<8x1xf32> to vector<8x8xf32>
    %45 = arith.mulf %40, %44 : vector<8x8xf32>
    %cst_20 = arith.constant dense<0.000000e+00> : vector<8x16xf32>
    %46 = tpu.matmul %45, %32, %cst_20 {dimension_numbers = #tpu.dot_dimension_numbers<[1], [0], [0], [1], [0, 0, 1, 1], [], []>} : vector<8x8xf32>, vector<8x16xf32>, vector<8x16xf32> -> vector<8x16xf32>
    %47 = vector.extract_strided_slice %29 {offsets = [0, 16], sizes = [8, 16], strides = [1, 1]} : vector<16x96xf32> to vector<8x16xf32>
    %48 = vector.extract_strided_slice %29 {offsets = [0, 48], sizes = [8, 16], strides = [1, 1]} : vector<16x96xf32> to vector<8x16xf32>
    %49 = vector.extract_strided_slice %29 {offsets = [0, 80], sizes = [8, 16], strides = [1, 1]} : vector<16x96xf32> to vector<8x16xf32>
    %cst_21 = arith.constant dense<0.000000e+00> : vector<8x8xf32>
    %50 = tpu.matmul %47, %48, %cst_21 {dimension_numbers = #tpu.dot_dimension_numbers<[1], [1], [0], [0], [0, 0, 1, 0], [], []>} : vector<8x16xf32>, vector<8x16xf32>, vector<8x8xf32> -> vector<8x8xf32>
    %cst_22 = arith.constant 2.500000e-01 : f32
    %51 = vector.broadcast %cst_22 : f32 to vector<8x8xf32>
    %52 = arith.mulf %50, %51 : vector<8x8xf32>
    %cst_23 = arith.constant dense<0xFF800000> : vector<8xf32>
    %53 = vector.multi_reduction <maximumf>, %52, %cst_23 [1] : vector<8x8xf32> to vector<8xf32>
    %54 = vector.shape_cast %53 : vector<8xf32> to vector<8x1xf32>
    %55 = vector.broadcast %54 : vector<8x1xf32> to vector<8x8xf32>
    %56 = arith.subf %52, %55 : vector<8x8xf32>
    %57 = math.exp %56 : vector<8x8xf32>
    %cst_24 = arith.constant dense<0.000000e+00> : vector<8xf32>
    %58 = vector.multi_reduction <add>, %57, %cst_24 [1] : vector<8x8xf32> to vector<8xf32>
    %59 = vector.shape_cast %58 : vector<8xf32> to vector<8x1xf32>
    %60 = tpu.reciprocal %59 {approx = true} : vector<8x1xf32> -> vector<8x1xf32>
    %61 = vector.broadcast %60 : vector<8x1xf32> to vector<8x8xf32>
    %62 = arith.mulf %57, %61 : vector<8x8xf32>
    %cst_25 = arith.constant dense<0.000000e+00> : vector<8x16xf32>
    %63 = tpu.matmul %62, %49, %cst_25 {dimension_numbers = #tpu.dot_dimension_numbers<[1], [0], [0], [1], [0, 0, 1, 1], [], []>} : vector<8x8xf32>, vector<8x16xf32>, vector<8x16xf32> -> vector<8x16xf32>
    %64 = tpu.concatenate %46, %63 in 1 : vector<8x16xf32>, vector<8x16xf32> -> vector<8x32xf32>
    %65 = vector.extract_strided_slice %29 {offsets = [8, 0], sizes = [8, 16], strides = [1, 1]} : vector<16x96xf32> to vector<8x16xf32>
    %66 = vector.extract_strided_slice %29 {offsets = [8, 32], sizes = [8, 16], strides = [1, 1]} : vector<16x96xf32> to vector<8x16xf32>
    %67 = vector.extract_strided_slice %29 {offsets = [8, 64], sizes = [8, 16], strides = [1, 1]} : vector<16x96xf32> to vector<8x16xf32>
    %cst_26 = arith.constant dense<0.000000e+00> : vector<8x8xf32>
    %68 = tpu.matmul %65, %66, %cst_26 {dimension_numbers = #tpu.dot_dimension_numbers<[1], [1], [0], [0], [0, 0, 1, 0], [], []>} : vector<8x16xf32>, vector<8x16xf32>, vector<8x8xf32> -> vector<8x8xf32>
    %cst_27 = arith.constant 2.500000e-01 : f32
    %69 = vector.broadcast %cst_27 : f32 to vector<8x8xf32>
    %70 = arith.mulf %68, %69 : vector<8x8xf32>
    %cst_28 = arith.constant dense<0xFF800000> : vector<8xf32>
    %71 = vector.multi_reduction <maximumf>, %70, %cst_28 [1] : vector<8x8xf32> to vector<8xf32>
    %72 = vector.shape_cast %71 : vector<8xf32> to vector<8x1xf32>
    %73 = vector.broadcast %72 : vector<8x1xf32> to vector<8x8xf32>
    %74 = arith.subf %70, %73 : vector<8x8xf32>
    %75 = math.exp %74 : vector<8x8xf32>
    %cst_29 = arith.constant dense<0.000000e+00> : vector<8xf32>
    %76 = vector.multi_reduction <add>, %75, %cst_29 [1] : vector<8x8xf32> to vector<8xf32>
    %77 = vector.shape_cast %76 : vector<8xf32> to vector<8x1xf32>
    %78 = tpu.reciprocal %77 {approx = true} : vector<8x1xf32> -> vector<8x1xf32>
    %79 = vector.broadcast %78 : vector<8x1xf32> to vector<8x8xf32>
    %80 = arith.mulf %75, %79 : vector<8x8xf32>
    %cst_30 = arith.constant dense<0.000000e+00> : vector<8x16xf32>
    %81 = tpu.matmul %80, %67, %cst_30 {dimension_numbers = #tpu.dot_dimension_numbers<[1], [0], [0], [1], [0, 0, 1, 1], [], []>} : vector<8x8xf32>, vector<8x16xf32>, vector<8x16xf32> -> vector<8x16xf32>
    %82 = vector.extract_strided_slice %29 {offsets = [8, 16], sizes = [8, 16], strides = [1, 1]} : vector<16x96xf32> to vector<8x16xf32>
    %83 = vector.extract_strided_slice %29 {offsets = [8, 48], sizes = [8, 16], strides = [1, 1]} : vector<16x96xf32> to vector<8x16xf32>
    %84 = vector.extract_strided_slice %29 {offsets = [8, 80], sizes = [8, 16], strides = [1, 1]} : vector<16x96xf32> to vector<8x16xf32>
    %cst_31 = arith.constant dense<0.000000e+00> : vector<8x8xf32>
    %85 = tpu.matmul %82, %83, %cst_31 {dimension_numbers = #tpu.dot_dimension_numbers<[1], [1], [0], [0], [0, 0, 1, 0], [], []>} : vector<8x16xf32>, vector<8x16xf32>, vector<8x8xf32> -> vector<8x8xf32>
    %cst_32 = arith.constant 2.500000e-01 : f32
    %86 = vector.broadcast %cst_32 : f32 to vector<8x8xf32>
    %87 = arith.mulf %85, %86 : vector<8x8xf32>
    %cst_33 = arith.constant dense<0xFF800000> : vector<8xf32>
    %88 = vector.multi_reduction <maximumf>, %87, %cst_33 [1] : vector<8x8xf32> to vector<8xf32>
    %89 = vector.shape_cast %88 : vector<8xf32> to vector<8x1xf32>
    %90 = vector.broadcast %89 : vector<8x1xf32> to vector<8x8xf32>
    %91 = arith.subf %87, %90 : vector<8x8xf32>
    %92 = math.exp %91 : vector<8x8xf32>
    %cst_34 = arith.constant dense<0.000000e+00> : vector<8xf32>
    %93 = vector.multi_reduction <add>, %92, %cst_34 [1] : vector<8x8xf32> to vector<8xf32>
    %94 = vector.shape_cast %93 : vector<8xf32> to vector<8x1xf32>
    %95 = tpu.reciprocal %94 {approx = true} : vector<8x1xf32> -> vector<8x1xf32>
    %96 = vector.broadcast %95 : vector<8x1xf32> to vector<8x8xf32>
    %97 = arith.mulf %92, %96 : vector<8x8xf32>
    %cst_35 = arith.constant dense<0.000000e+00> : vector<8x16xf32>
    %98 = tpu.matmul %97, %84, %cst_35 {dimension_numbers = #tpu.dot_dimension_numbers<[1], [0], [0], [1], [0, 0, 1, 1], [], []>} : vector<8x8xf32>, vector<8x16xf32>, vector<8x16xf32> -> vector<8x16xf32>
    %99 = tpu.concatenate %81, %98 in 1 : vector<8x16xf32>, vector<8x16xf32> -> vector<8x32xf32>
    %100 = tpu.concatenate %64, %99 in 0 : vector<8x32xf32>, vector<8x32xf32> -> vector<16x32xf32>
    %c0_36 = arith.constant 0 : index
    %c0_37 = arith.constant 0 : index
    %c0_38 = arith.constant 0 : index
    %101 = vector.load %arg5[%c0_36, %c0_37, %c0_38] : memref<2x32x32xf32, #tpu.memory_space<vmem>>, vector<1x32x32xf32>
    %102 = vector.shape_cast %101 : vector<1x32x32xf32> to vector<32x32xf32>
    %cst_39 = arith.constant dense<0.000000e+00> : vector<16x32xf32>
    %103 = tpu.matmul %100, %102, %cst_39 {dimension_numbers = #tpu.dot_dimension_numbers<[1], [0], [0], [1], [0, 0, 1, 1], [], []>} : vector<16x32xf32>, vector<32x32xf32>, vector<16x32xf32> -> vector<16x32xf32>
    %c0_40 = arith.constant 0 : index
    %c0_41 = arith.constant 0 : index
    %c0_42 = arith.constant 0 : index
    %104 = vector.load %arg6[%c0_40, %c0_41, %c0_42] : memref<2x1x32xf32, #tpu.memory_space<vmem>>, vector<1x1x32xf32>
    %105 = vector.shape_cast %104 : vector<1x1x32xf32> to vector<1x32xf32>
    %106 = vector.broadcast %105 : vector<1x32xf32> to vector<16x32xf32>
    %107 = arith.addf %103, %106 : vector<16x32xf32>
    %108 = arith.addf %107, %22 : vector<16x32xf32>
    %c0_43 = arith.constant 0 : index
    %c0_44 = arith.constant 0 : index
    %c0_45 = arith.constant 0 : index
    %109 = vector.load %arg7[%c0_43, %c0_44, %c0_45] : memref<2x1x32xf32, #tpu.memory_space<vmem>>, vector<1x1x32xf32>
    %110 = vector.shape_cast %109 : vector<1x1x32xf32> to vector<1x32xf32>
    %c0_46 = arith.constant 0 : index
    %c0_47 = arith.constant 0 : index
    %c0_48 = arith.constant 0 : index
    %111 = vector.load %arg8[%c0_46, %c0_47, %c0_48] : memref<2x1x32xf32, #tpu.memory_space<vmem>>, vector<1x1x32xf32>
    %112 = vector.shape_cast %111 : vector<1x1x32xf32> to vector<1x32xf32>
    %cst_49 = arith.constant dense<0.000000e+00> : vector<16xf32>
    %113 = vector.multi_reduction <add>, %108, %cst_49 [1] : vector<16x32xf32> to vector<16xf32>
    %114 = vector.shape_cast %113 : vector<16xf32> to vector<16x1xf32>
    %cst_50 = arith.constant 3.200000e+01 : f32
    %115 = vector.broadcast %cst_50 : f32 to vector<16x1xf32>
    %116 = arith.divf %114, %115 : vector<16x1xf32>
    %117 = vector.broadcast %116 : vector<16x1xf32> to vector<16x32xf32>
    %118 = arith.subf %108, %117 : vector<16x32xf32>
    %119 = arith.mulf %118, %118 : vector<16x32xf32>
    %cst_51 = arith.constant dense<0.000000e+00> : vector<16xf32>
    %120 = vector.multi_reduction <add>, %119, %cst_51 [1] : vector<16x32xf32> to vector<16xf32>
    %121 = vector.shape_cast %120 : vector<16xf32> to vector<16x1xf32>
    %cst_52 = arith.constant 3.200000e+01 : f32
    %122 = vector.broadcast %cst_52 : f32 to vector<16x1xf32>
    %123 = arith.divf %121, %122 : vector<16x1xf32>
    %cst_53 = arith.constant 9.99999996E-13 : f32
    %124 = vector.broadcast %cst_53 : f32 to vector<16x1xf32>
    %125 = arith.addf %123, %124 : vector<16x1xf32>
    %126 = math.rsqrt %125 : vector<16x1xf32>
    %127 = vector.broadcast %126 : vector<16x1xf32> to vector<16x32xf32>
    %128 = arith.mulf %118, %127 : vector<16x32xf32>
    %129 = vector.broadcast %110 : vector<1x32xf32> to vector<16x32xf32>
    %130 = arith.mulf %128, %129 : vector<16x32xf32>
    %131 = vector.broadcast %112 : vector<1x32xf32> to vector<16x32xf32>
    %132 = arith.addf %130, %131 : vector<16x32xf32>
    %c0_54 = arith.constant 0 : index
    %c0_55 = arith.constant 0 : index
    %c0_56 = arith.constant 0 : index
    %133 = vector.load %arg9[%c0_54, %c0_55, %c0_56] : memref<2x32x128xf32, #tpu.memory_space<vmem>>, vector<1x32x128xf32>
    %134 = vector.shape_cast %133 : vector<1x32x128xf32> to vector<32x128xf32>
    %cst_57 = arith.constant dense<0.000000e+00> : vector<16x128xf32>
    %135 = tpu.matmul %132, %134, %cst_57 {dimension_numbers = #tpu.dot_dimension_numbers<[1], [0], [0], [1], [0, 0, 1, 1], [], []>} : vector<16x32xf32>, vector<32x128xf32>, vector<16x128xf32> -> vector<16x128xf32>
    %c0_58 = arith.constant 0 : index
    %c0_59 = arith.constant 0 : index
    %c0_60 = arith.constant 0 : index
    %136 = vector.load %arg10[%c0_58, %c0_59, %c0_60] : memref<2x1x128xf32, #tpu.memory_space<vmem>>, vector<1x1x128xf32>
    %137 = vector.shape_cast %136 : vector<1x1x128xf32> to vector<1x128xf32>
    %138 = vector.broadcast %137 : vector<1x128xf32> to vector<16x128xf32>
    %139 = arith.addf %135, %138 : vector<16x128xf32>
    %cst_61 = arith.constant 5.000000e-01 : f32
    %140 = vector.broadcast %cst_61 : f32 to vector<16x128xf32>
    %141 = arith.mulf %140, %139 : vector<16x128xf32>
    %cst_62 = arith.constant 0.707106769 : f32
    %142 = vector.broadcast %cst_62 : f32 to vector<16x128xf32>
    %143 = arith.mulf %139, %142 : vector<16x128xf32>
    %144 = math.erf %143 : vector<16x128xf32>
    %cst_63 = arith.constant 1.000000e+00 : f32
    %145 = vector.broadcast %cst_63 : f32 to vector<16x128xf32>
    %146 = arith.addf %145, %144 : vector<16x128xf32>
    %147 = arith.mulf %141, %146 : vector<16x128xf32>
    %c0_64 = arith.constant 0 : index
    %c0_65 = arith.constant 0 : index
    %c0_66 = arith.constant 0 : index
    %148 = vector.load %arg11[%c0_64, %c0_65, %c0_66] : memref<2x128x32xf32, #tpu.memory_space<vmem>>, vector<1x128x32xf32>
    %149 = vector.shape_cast %148 : vector<1x128x32xf32> to vector<128x32xf32>
    %cst_67 = arith.constant dense<0.000000e+00> : vector<16x32xf32>
    %150 = tpu.matmul %147, %149, %cst_67 {dimension_numbers = #tpu.dot_dimension_numbers<[1], [0], [0], [1], [0, 0, 1, 1], [], []>} : vector<16x128xf32>, vector<128x32xf32>, vector<16x32xf32> -> vector<16x32xf32>
    %c0_68 = arith.constant 0 : index
    %c0_69 = arith.constant 0 : index
    %c0_70 = arith.constant 0 : index
    %151 = vector.load %arg12[%c0_68, %c0_69, %c0_70] : memref<2x1x32xf32, #tpu.memory_space<vmem>>, vector<1x1x32xf32>
    %152 = vector.shape_cast %151 : vector<1x1x32xf32> to vector<1x32xf32>
    %153 = vector.broadcast %152 : vector<1x32xf32> to vector<16x32xf32>
    %154 = arith.addf %150, %153 : vector<16x32xf32>
    %155 = arith.addf %154, %132 : vector<16x32xf32>
    %c0_71 = arith.constant 0 : index
    %c0_72 = arith.constant 0 : index
    %c0_73 = arith.constant 0 : index
    %156 = vector.load %arg13[%c0_71, %c0_72, %c0_73] : memref<2x1x32xf32, #tpu.memory_space<vmem>>, vector<1x1x32xf32>
    %157 = vector.shape_cast %156 : vector<1x1x32xf32> to vector<1x32xf32>
    %c0_74 = arith.constant 0 : index
    %c0_75 = arith.constant 0 : index
    %c0_76 = arith.constant 0 : index
    %158 = vector.load %arg14[%c0_74, %c0_75, %c0_76] : memref<2x1x32xf32, #tpu.memory_space<vmem>>, vector<1x1x32xf32>
    %159 = vector.shape_cast %158 : vector<1x1x32xf32> to vector<1x32xf32>
    %cst_77 = arith.constant dense<0.000000e+00> : vector<16xf32>
    %160 = vector.multi_reduction <add>, %155, %cst_77 [1] : vector<16x32xf32> to vector<16xf32>
    %161 = vector.shape_cast %160 : vector<16xf32> to vector<16x1xf32>
    %cst_78 = arith.constant 3.200000e+01 : f32
    %162 = vector.broadcast %cst_78 : f32 to vector<16x1xf32>
    %163 = arith.divf %161, %162 : vector<16x1xf32>
    %164 = vector.broadcast %163 : vector<16x1xf32> to vector<16x32xf32>
    %165 = arith.subf %155, %164 : vector<16x32xf32>
    %166 = arith.mulf %165, %165 : vector<16x32xf32>
    %cst_79 = arith.constant dense<0.000000e+00> : vector<16xf32>
    %167 = vector.multi_reduction <add>, %166, %cst_79 [1] : vector<16x32xf32> to vector<16xf32>
    %168 = vector.shape_cast %167 : vector<16xf32> to vector<16x1xf32>
    %cst_80 = arith.constant 3.200000e+01 : f32
    %169 = vector.broadcast %cst_80 : f32 to vector<16x1xf32>
    %170 = arith.divf %168, %169 : vector<16x1xf32>
    %cst_81 = arith.constant 9.99999996E-13 : f32
    %171 = vector.broadcast %cst_81 : f32 to vector<16x1xf32>
    %172 = arith.addf %170, %171 : vector<16x1xf32>
    %173 = math.rsqrt %172 : vector<16x1xf32>
    %174 = vector.broadcast %173 : vector<16x1xf32> to vector<16x32xf32>
    %175 = arith.mulf %165, %174 : vector<16x32xf32>
    %176 = vector.broadcast %157 : vector<1x32xf32> to vector<16x32xf32>
    %177 = arith.mulf %175, %176 : vector<16x32xf32>
    %178 = vector.broadcast %159 : vector<1x32xf32> to vector<16x32xf32>
    %179 = arith.addf %177, %178 : vector<16x32xf32>
    %c1 = arith.constant 1 : index
    %c0_82 = arith.constant 0 : index
    %c0_83 = arith.constant 0 : index
    %180 = vector.load %arg3[%c1, %c0_82, %c0_83] : memref<2x32x96xf32, #tpu.memory_space<vmem>>, vector<1x32x96xf32>
    %181 = vector.shape_cast %180 : vector<1x32x96xf32> to vector<32x96xf32>
    %cst_84 = arith.constant dense<0.000000e+00> : vector<16x96xf32>
    %182 = tpu.matmul %179, %181, %cst_84 {dimension_numbers = #tpu.dot_dimension_numbers<[1], [0], [0], [1], [0, 0, 1, 1], [], []>} : vector<16x32xf32>, vector<32x96xf32>, vector<16x96xf32> -> vector<16x96xf32>
    %c1_85 = arith.constant 1 : index
    %c0_86 = arith.constant 0 : index
    %c0_87 = arith.constant 0 : index
    %183 = vector.load %arg4[%c1_85, %c0_86, %c0_87] : memref<2x1x96xf32, #tpu.memory_space<vmem>>, vector<1x1x96xf32>
    %184 = vector.shape_cast %183 : vector<1x1x96xf32> to vector<1x96xf32>
    %185 = vector.broadcast %184 : vector<1x96xf32> to vector<16x96xf32>
    %186 = arith.addf %182, %185 : vector<16x96xf32>
    %187 = vector.extract_strided_slice %186 {offsets = [0, 0], sizes = [8, 16], strides = [1, 1]} : vector<16x96xf32> to vector<8x16xf32>
    %188 = vector.extract_strided_slice %186 {offsets = [0, 32], sizes = [8, 16], strides = [1, 1]} : vector<16x96xf32> to vector<8x16xf32>
    %189 = vector.extract_strided_slice %186 {offsets = [0, 64], sizes = [8, 16], strides = [1, 1]} : vector<16x96xf32> to vector<8x16xf32>
    %cst_88 = arith.constant dense<0.000000e+00> : vector<8x8xf32>
    %190 = tpu.matmul %187, %188, %cst_88 {dimension_numbers = #tpu.dot_dimension_numbers<[1], [1], [0], [0], [0, 0, 1, 0], [], []>} : vector<8x16xf32>, vector<8x16xf32>, vector<8x8xf32> -> vector<8x8xf32>
    %cst_89 = arith.constant 2.500000e-01 : f32
    %191 = vector.broadcast %cst_89 : f32 to vector<8x8xf32>
    %192 = arith.mulf %190, %191 : vector<8x8xf32>
    %cst_90 = arith.constant dense<0xFF800000> : vector<8xf32>
    %193 = vector.multi_reduction <maximumf>, %192, %cst_90 [1] : vector<8x8xf32> to vector<8xf32>
    %194 = vector.shape_cast %193 : vector<8xf32> to vector<8x1xf32>
    %195 = vector.broadcast %194 : vector<8x1xf32> to vector<8x8xf32>
    %196 = arith.subf %192, %195 : vector<8x8xf32>
    %197 = math.exp %196 : vector<8x8xf32>
    %cst_91 = arith.constant dense<0.000000e+00> : vector<8xf32>
    %198 = vector.multi_reduction <add>, %197, %cst_91 [1] : vector<8x8xf32> to vector<8xf32>
    %199 = vector.shape_cast %198 : vector<8xf32> to vector<8x1xf32>
    %200 = tpu.reciprocal %199 {approx = true} : vector<8x1xf32> -> vector<8x1xf32>
    %201 = vector.broadcast %200 : vector<8x1xf32> to vector<8x8xf32>
    %202 = arith.mulf %197, %201 : vector<8x8xf32>
    %cst_92 = arith.constant dense<0.000000e+00> : vector<8x16xf32>
    %203 = tpu.matmul %202, %189, %cst_92 {dimension_numbers = #tpu.dot_dimension_numbers<[1], [0], [0], [1], [0, 0, 1, 1], [], []>} : vector<8x8xf32>, vector<8x16xf32>, vector<8x16xf32> -> vector<8x16xf32>
    %204 = vector.extract_strided_slice %186 {offsets = [0, 16], sizes = [8, 16], strides = [1, 1]} : vector<16x96xf32> to vector<8x16xf32>
    %205 = vector.extract_strided_slice %186 {offsets = [0, 48], sizes = [8, 16], strides = [1, 1]} : vector<16x96xf32> to vector<8x16xf32>
    %206 = vector.extract_strided_slice %186 {offsets = [0, 80], sizes = [8, 16], strides = [1, 1]} : vector<16x96xf32> to vector<8x16xf32>
    %cst_93 = arith.constant dense<0.000000e+00> : vector<8x8xf32>
    %207 = tpu.matmul %204, %205, %cst_93 {dimension_numbers = #tpu.dot_dimension_numbers<[1], [1], [0], [0], [0, 0, 1, 0], [], []>} : vector<8x16xf32>, vector<8x16xf32>, vector<8x8xf32> -> vector<8x8xf32>
    %cst_94 = arith.constant 2.500000e-01 : f32
    %208 = vector.broadcast %cst_94 : f32 to vector<8x8xf32>
    %209 = arith.mulf %207, %208 : vector<8x8xf32>
    %cst_95 = arith.constant dense<0xFF800000> : vector<8xf32>
    %210 = vector.multi_reduction <maximumf>, %209, %cst_95 [1] : vector<8x8xf32> to vector<8xf32>
    %211 = vector.shape_cast %210 : vector<8xf32> to vector<8x1xf32>
    %212 = vector.broadcast %211 : vector<8x1xf32> to vector<8x8xf32>
    %213 = arith.subf %209, %212 : vector<8x8xf32>
    %214 = math.exp %213 : vector<8x8xf32>
    %cst_96 = arith.constant dense<0.000000e+00> : vector<8xf32>
    %215 = vector.multi_reduction <add>, %214, %cst_96 [1] : vector<8x8xf32> to vector<8xf32>
    %216 = vector.shape_cast %215 : vector<8xf32> to vector<8x1xf32>
    %217 = tpu.reciprocal %216 {approx = true} : vector<8x1xf32> -> vector<8x1xf32>
    %218 = vector.broadcast %217 : vector<8x1xf32> to vector<8x8xf32>
    %219 = arith.mulf %214, %218 : vector<8x8xf32>
    %cst_97 = arith.constant dense<0.000000e+00> : vector<8x16xf32>
    %220 = tpu.matmul %219, %206, %cst_97 {dimension_numbers = #tpu.dot_dimension_numbers<[1], [0], [0], [1], [0, 0, 1, 1], [], []>} : vector<8x8xf32>, vector<8x16xf32>, vector<8x16xf32> -> vector<8x16xf32>
    %221 = tpu.concatenate %203, %220 in 1 : vector<8x16xf32>, vector<8x16xf32> -> vector<8x32xf32>
    %222 = vector.extract_strided_slice %186 {offsets = [8, 0], sizes = [8, 16], strides = [1, 1]} : vector<16x96xf32> to vector<8x16xf32>
    %223 = vector.extract_strided_slice %186 {offsets = [8, 32], sizes = [8, 16], strides = [1, 1]} : vector<16x96xf32> to vector<8x16xf32>
    %224 = vector.extract_strided_slice %186 {offsets = [8, 64], sizes = [8, 16], strides = [1, 1]} : vector<16x96xf32> to vector<8x16xf32>
    %cst_98 = arith.constant dense<0.000000e+00> : vector<8x8xf32>
    %225 = tpu.matmul %222, %223, %cst_98 {dimension_numbers = #tpu.dot_dimension_numbers<[1], [1], [0], [0], [0, 0, 1, 0], [], []>} : vector<8x16xf32>, vector<8x16xf32>, vector<8x8xf32> -> vector<8x8xf32>
    %cst_99 = arith.constant 2.500000e-01 : f32
    %226 = vector.broadcast %cst_99 : f32 to vector<8x8xf32>
    %227 = arith.mulf %225, %226 : vector<8x8xf32>
    %cst_100 = arith.constant dense<0xFF800000> : vector<8xf32>
    %228 = vector.multi_reduction <maximumf>, %227, %cst_100 [1] : vector<8x8xf32> to vector<8xf32>
    %229 = vector.shape_cast %228 : vector<8xf32> to vector<8x1xf32>
    %230 = vector.broadcast %229 : vector<8x1xf32> to vector<8x8xf32>
    %231 = arith.subf %227, %230 : vector<8x8xf32>
    %232 = math.exp %231 : vector<8x8xf32>
    %cst_101 = arith.constant dense<0.000000e+00> : vector<8xf32>
    %233 = vector.multi_reduction <add>, %232, %cst_101 [1] : vector<8x8xf32> to vector<8xf32>
    %234 = vector.shape_cast %233 : vector<8xf32> to vector<8x1xf32>
    %235 = tpu.reciprocal %234 {approx = true} : vector<8x1xf32> -> vector<8x1xf32>
    %236 = vector.broadcast %235 : vector<8x1xf32> to vector<8x8xf32>
    %237 = arith.mulf %232, %236 : vector<8x8xf32>
    %cst_102 = arith.constant dense<0.000000e+00> : vector<8x16xf32>
    %238 = tpu.matmul %237, %224, %cst_102 {dimension_numbers = #tpu.dot_dimension_numbers<[1], [0], [0], [1], [0, 0, 1, 1], [], []>} : vector<8x8xf32>, vector<8x16xf32>, vector<8x16xf32> -> vector<8x16xf32>
    %239 = vector.extract_strided_slice %186 {offsets = [8, 16], sizes = [8, 16], strides = [1, 1]} : vector<16x96xf32> to vector<8x16xf32>
    %240 = vector.extract_strided_slice %186 {offsets = [8, 48], sizes = [8, 16], strides = [1, 1]} : vector<16x96xf32> to vector<8x16xf32>
    %241 = vector.extract_strided_slice %186 {offsets = [8, 80], sizes = [8, 16], strides = [1, 1]} : vector<16x96xf32> to vector<8x16xf32>
    %cst_103 = arith.constant dense<0.000000e+00> : vector<8x8xf32>
    %242 = tpu.matmul %239, %240, %cst_103 {dimension_numbers = #tpu.dot_dimension_numbers<[1], [1], [0], [0], [0, 0, 1, 0], [], []>} : vector<8x16xf32>, vector<8x16xf32>, vector<8x8xf32> -> vector<8x8xf32>
    %cst_104 = arith.constant 2.500000e-01 : f32
    %243 = vector.broadcast %cst_104 : f32 to vector<8x8xf32>
    %244 = arith.mulf %242, %243 : vector<8x8xf32>
    %cst_105 = arith.constant dense<0xFF800000> : vector<8xf32>
    %245 = vector.multi_reduction <maximumf>, %244, %cst_105 [1] : vector<8x8xf32> to vector<8xf32>
    %246 = vector.shape_cast %245 : vector<8xf32> to vector<8x1xf32>
    %247 = vector.broadcast %246 : vector<8x1xf32> to vector<8x8xf32>
    %248 = arith.subf %244, %247 : vector<8x8xf32>
    %249 = math.exp %248 : vector<8x8xf32>
    %cst_106 = arith.constant dense<0.000000e+00> : vector<8xf32>
    %250 = vector.multi_reduction <add>, %249, %cst_106 [1] : vector<8x8xf32> to vector<8xf32>
    %251 = vector.shape_cast %250 : vector<8xf32> to vector<8x1xf32>
    %252 = tpu.reciprocal %251 {approx = true} : vector<8x1xf32> -> vector<8x1xf32>
    %253 = vector.broadcast %252 : vector<8x1xf32> to vector<8x8xf32>
    %254 = arith.mulf %249, %253 : vector<8x8xf32>
    %cst_107 = arith.constant dense<0.000000e+00> : vector<8x16xf32>
    %255 = tpu.matmul %254, %241, %cst_107 {dimension_numbers = #tpu.dot_dimension_numbers<[1], [0], [0], [1], [0, 0, 1, 1], [], []>} : vector<8x8xf32>, vector<8x16xf32>, vector<8x16xf32> -> vector<8x16xf32>
    %256 = tpu.concatenate %238, %255 in 1 : vector<8x16xf32>, vector<8x16xf32> -> vector<8x32xf32>
    %257 = tpu.concatenate %221, %256 in 0 : vector<8x32xf32>, vector<8x32xf32> -> vector<16x32xf32>
    %c1_108 = arith.constant 1 : index
    %c0_109 = arith.constant 0 : index
    %c0_110 = arith.constant 0 : index
    %258 = vector.load %arg5[%c1_108, %c0_109, %c0_110] : memref<2x32x32xf32, #tpu.memory_space<vmem>>, vector<1x32x32xf32>
    %259 = vector.shape_cast %258 : vector<1x32x32xf32> to vector<32x32xf32>
    %cst_111 = arith.constant dense<0.000000e+00> : vector<16x32xf32>
    %260 = tpu.matmul %257, %259, %cst_111 {dimension_numbers = #tpu.dot_dimension_numbers<[1], [0], [0], [1], [0, 0, 1, 1], [], []>} : vector<16x32xf32>, vector<32x32xf32>, vector<16x32xf32> -> vector<16x32xf32>
    %c1_112 = arith.constant 1 : index
    %c0_113 = arith.constant 0 : index
    %c0_114 = arith.constant 0 : index
    %261 = vector.load %arg6[%c1_112, %c0_113, %c0_114] : memref<2x1x32xf32, #tpu.memory_space<vmem>>, vector<1x1x32xf32>
    %262 = vector.shape_cast %261 : vector<1x1x32xf32> to vector<1x32xf32>
    %263 = vector.broadcast %262 : vector<1x32xf32> to vector<16x32xf32>
    %264 = arith.addf %260, %263 : vector<16x32xf32>
    %265 = arith.addf %264, %179 : vector<16x32xf32>
    %c1_115 = arith.constant 1 : index
    %c0_116 = arith.constant 0 : index
    %c0_117 = arith.constant 0 : index
    %266 = vector.load %arg7[%c1_115, %c0_116, %c0_117] : memref<2x1x32xf32, #tpu.memory_space<vmem>>, vector<1x1x32xf32>
    %267 = vector.shape_cast %266 : vector<1x1x32xf32> to vector<1x32xf32>
    %c1_118 = arith.constant 1 : index
    %c0_119 = arith.constant 0 : index
    %c0_120 = arith.constant 0 : index
    %268 = vector.load %arg8[%c1_118, %c0_119, %c0_120] : memref<2x1x32xf32, #tpu.memory_space<vmem>>, vector<1x1x32xf32>
    %269 = vector.shape_cast %268 : vector<1x1x32xf32> to vector<1x32xf32>
    %cst_121 = arith.constant dense<0.000000e+00> : vector<16xf32>
    %270 = vector.multi_reduction <add>, %265, %cst_121 [1] : vector<16x32xf32> to vector<16xf32>
    %271 = vector.shape_cast %270 : vector<16xf32> to vector<16x1xf32>
    %cst_122 = arith.constant 3.200000e+01 : f32
    %272 = vector.broadcast %cst_122 : f32 to vector<16x1xf32>
    %273 = arith.divf %271, %272 : vector<16x1xf32>
    %274 = vector.broadcast %273 : vector<16x1xf32> to vector<16x32xf32>
    %275 = arith.subf %265, %274 : vector<16x32xf32>
    %276 = arith.mulf %275, %275 : vector<16x32xf32>
    %cst_123 = arith.constant dense<0.000000e+00> : vector<16xf32>
    %277 = vector.multi_reduction <add>, %276, %cst_123 [1] : vector<16x32xf32> to vector<16xf32>
    %278 = vector.shape_cast %277 : vector<16xf32> to vector<16x1xf32>
    %cst_124 = arith.constant 3.200000e+01 : f32
    %279 = vector.broadcast %cst_124 : f32 to vector<16x1xf32>
    %280 = arith.divf %278, %279 : vector<16x1xf32>
    %cst_125 = arith.constant 9.99999996E-13 : f32
    %281 = vector.broadcast %cst_125 : f32 to vector<16x1xf32>
    %282 = arith.addf %280, %281 : vector<16x1xf32>
    %283 = math.rsqrt %282 : vector<16x1xf32>
    %284 = vector.broadcast %283 : vector<16x1xf32> to vector<16x32xf32>
    %285 = arith.mulf %275, %284 : vector<16x32xf32>
    %286 = vector.broadcast %267 : vector<1x32xf32> to vector<16x32xf32>
    %287 = arith.mulf %285, %286 : vector<16x32xf32>
    %288 = vector.broadcast %269 : vector<1x32xf32> to vector<16x32xf32>
    %289 = arith.addf %287, %288 : vector<16x32xf32>
    %c1_126 = arith.constant 1 : index
    %c0_127 = arith.constant 0 : index
    %c0_128 = arith.constant 0 : index
    %290 = vector.load %arg9[%c1_126, %c0_127, %c0_128] : memref<2x32x128xf32, #tpu.memory_space<vmem>>, vector<1x32x128xf32>
    %291 = vector.shape_cast %290 : vector<1x32x128xf32> to vector<32x128xf32>
    %cst_129 = arith.constant dense<0.000000e+00> : vector<16x128xf32>
    %292 = tpu.matmul %289, %291, %cst_129 {dimension_numbers = #tpu.dot_dimension_numbers<[1], [0], [0], [1], [0, 0, 1, 1], [], []>} : vector<16x32xf32>, vector<32x128xf32>, vector<16x128xf32> -> vector<16x128xf32>
    %c1_130 = arith.constant 1 : index
    %c0_131 = arith.constant 0 : index
    %c0_132 = arith.constant 0 : index
    %293 = vector.load %arg10[%c1_130, %c0_131, %c0_132] : memref<2x1x128xf32, #tpu.memory_space<vmem>>, vector<1x1x128xf32>
    %294 = vector.shape_cast %293 : vector<1x1x128xf32> to vector<1x128xf32>
    %295 = vector.broadcast %294 : vector<1x128xf32> to vector<16x128xf32>
    %296 = arith.addf %292, %295 : vector<16x128xf32>
    %cst_133 = arith.constant 5.000000e-01 : f32
    %297 = vector.broadcast %cst_133 : f32 to vector<16x128xf32>
    %298 = arith.mulf %297, %296 : vector<16x128xf32>
    %cst_134 = arith.constant 0.707106769 : f32
    %299 = vector.broadcast %cst_134 : f32 to vector<16x128xf32>
    %300 = arith.mulf %296, %299 : vector<16x128xf32>
    %301 = math.erf %300 : vector<16x128xf32>
    %cst_135 = arith.constant 1.000000e+00 : f32
    %302 = vector.broadcast %cst_135 : f32 to vector<16x128xf32>
    %303 = arith.addf %302, %301 : vector<16x128xf32>
    %304 = arith.mulf %298, %303 : vector<16x128xf32>
    %c1_136 = arith.constant 1 : index
    %c0_137 = arith.constant 0 : index
    %c0_138 = arith.constant 0 : index
    %305 = vector.load %arg11[%c1_136, %c0_137, %c0_138] : memref<2x128x32xf32, #tpu.memory_space<vmem>>, vector<1x128x32xf32>
    %306 = vector.shape_cast %305 : vector<1x128x32xf32> to vector<128x32xf32>
    %cst_139 = arith.constant dense<0.000000e+00> : vector<16x32xf32>
    %307 = tpu.matmul %304, %306, %cst_139 {dimension_numbers = #tpu.dot_dimension_numbers<[1], [0], [0], [1], [0, 0, 1, 1], [], []>} : vector<16x128xf32>, vector<128x32xf32>, vector<16x32xf32> -> vector<16x32xf32>
    %c1_140 = arith.constant 1 : index
    %c0_141 = arith.constant 0 : index
    %c0_142 = arith.constant 0 : index
    %308 = vector.load %arg12[%c1_140, %c0_141, %c0_142] : memref<2x1x32xf32, #tpu.memory_space<vmem>>, vector<1x1x32xf32>
    %309 = vector.shape_cast %308 : vector<1x1x32xf32> to vector<1x32xf32>
    %310 = vector.broadcast %309 : vector<1x32xf32> to vector<16x32xf32>
    %311 = arith.addf %307, %310 : vector<16x32xf32>
    %312 = arith.addf %311, %289 : vector<16x32xf32>
    %c1_143 = arith.constant 1 : index
    %c0_144 = arith.constant 0 : index
    %c0_145 = arith.constant 0 : index
    %313 = vector.load %arg13[%c1_143, %c0_144, %c0_145] : memref<2x1x32xf32, #tpu.memory_space<vmem>>, vector<1x1x32xf32>
    %314 = vector.shape_cast %313 : vector<1x1x32xf32> to vector<1x32xf32>
    %c1_146 = arith.constant 1 : index
    %c0_147 = arith.constant 0 : index
    %c0_148 = arith.constant 0 : index
    %315 = vector.load %arg14[%c1_146, %c0_147, %c0_148] : memref<2x1x32xf32, #tpu.memory_space<vmem>>, vector<1x1x32xf32>
    %316 = vector.shape_cast %315 : vector<1x1x32xf32> to vector<1x32xf32>
    %cst_149 = arith.constant dense<0.000000e+00> : vector<16xf32>
    %317 = vector.multi_reduction <add>, %312, %cst_149 [1] : vector<16x32xf32> to vector<16xf32>
    %318 = vector.shape_cast %317 : vector<16xf32> to vector<16x1xf32>
    %cst_150 = arith.constant 3.200000e+01 : f32
    %319 = vector.broadcast %cst_150 : f32 to vector<16x1xf32>
    %320 = arith.divf %318, %319 : vector<16x1xf32>
    %321 = vector.broadcast %320 : vector<16x1xf32> to vector<16x32xf32>
    %322 = arith.subf %312, %321 : vector<16x32xf32>
    %323 = arith.mulf %322, %322 : vector<16x32xf32>
    %cst_151 = arith.constant dense<0.000000e+00> : vector<16xf32>
    %324 = vector.multi_reduction <add>, %323, %cst_151 [1] : vector<16x32xf32> to vector<16xf32>
    %325 = vector.shape_cast %324 : vector<16xf32> to vector<16x1xf32>
    %cst_152 = arith.constant 3.200000e+01 : f32
    %326 = vector.broadcast %cst_152 : f32 to vector<16x1xf32>
    %327 = arith.divf %325, %326 : vector<16x1xf32>
    %cst_153 = arith.constant 9.99999996E-13 : f32
    %328 = vector.broadcast %cst_153 : f32 to vector<16x1xf32>
    %329 = arith.addf %327, %328 : vector<16x1xf32>
    %330 = math.rsqrt %329 : vector<16x1xf32>
    %331 = vector.broadcast %330 : vector<16x1xf32> to vector<16x32xf32>
    %332 = arith.mulf %322, %331 : vector<16x32xf32>
    %333 = vector.broadcast %314 : vector<1x32xf32> to vector<16x32xf32>
    %334 = arith.mulf %332, %333 : vector<16x32xf32>
    %335 = vector.broadcast %316 : vector<1x32xf32> to vector<16x32xf32>
    %336 = arith.addf %334, %335 : vector<16x32xf32>
    %337 = vector.extract_strided_slice %336 {offsets = [0, 0], sizes = [1, 32], strides = [1, 1]} : vector<16x32xf32> to vector<1x32xf32>
    %338 = vector.extract_strided_slice %336 {offsets = [8, 0], sizes = [1, 32], strides = [1, 1]} : vector<16x32xf32> to vector<1x32xf32>
    %339 = tpu.concatenate %337, %338 in 0 : vector<1x32xf32>, vector<1x32xf32> -> vector<2x32xf32>
    %c0_154 = arith.constant 0 : index
    %c0_155 = arith.constant 0 : index
    %340 = vector.load %arg15[%c0_154, %c0_155] : memref<32x32xf32, #tpu.memory_space<vmem>>, vector<32x32xf32>
    %cst_156 = arith.constant dense<0.000000e+00> : vector<2x32xf32>
    %341 = tpu.matmul %339, %340, %cst_156 {dimension_numbers = #tpu.dot_dimension_numbers<[1], [0], [0], [1], [0, 0, 1, 1], [], []>} : vector<2x32xf32>, vector<32x32xf32>, vector<2x32xf32> -> vector<2x32xf32>
    %c0_157 = arith.constant 0 : index
    %c0_158 = arith.constant 0 : index
    %342 = vector.load %arg16[%c0_157, %c0_158] : memref<1x32xf32, #tpu.memory_space<vmem>>, vector<1x32xf32>
    %343 = vector.broadcast %342 : vector<1x32xf32> to vector<2x32xf32>
    %344 = arith.addf %341, %343 : vector<2x32xf32>
    %345 = math.tanh %344 : vector<2x32xf32>
    %c0_159 = arith.constant 0 : index
    %c0_160 = arith.constant 0 : index
    %346 = vector.load %arg17[%c0_159, %c0_160] : memref<32x2xf32, #tpu.memory_space<vmem>>, vector<32x2xf32>
    %cst_161 = arith.constant dense<0.000000e+00> : vector<2x2xf32>
    %347 = tpu.matmul %345, %346, %cst_161 {dimension_numbers = #tpu.dot_dimension_numbers<[1], [0], [0], [1], [0, 0, 1, 1], [], []>} : vector<2x32xf32>, vector<32x2xf32>, vector<2x2xf32> -> vector<2x2xf32>
    %c0_162 = arith.constant 0 : index
    %c0_163 = arith.constant 0 : index
    %348 = vector.load %arg18[%c0_162, %c0_163] : memref<1x2xf32, #tpu.memory_space<vmem>>, vector<1x2xf32>
    %349 = vector.broadcast %348 : vector<1x2xf32> to vector<2x2xf32>
    %350 = arith.addf %347, %349 : vector<2x2xf32>
    %c0_164 = arith.constant 0 : index
    %c0_165 = arith.constant 0 : index
    %351 = vector.load %arg19[%c0_164, %c0_165] : memref<2x2xf32, #tpu.memory_space<vmem>>, vector<2x2xf32>
    tpu.vector_store %arg19[%c0_164, %c0_165], %350 {strides = array<i32>} : memref<2x2xf32, #tpu.memory_space<vmem>>, vector<2x2xf32>,
    return
  }
}

</mosaic_0001>

<bundles_post_ra>
// kernel: bert_forward.1
= control target key start
LH: loop header
LB: loop body
LE: loop exit
PB: predicated region body
PF: predicated region fallthrough
CT: control target
= control target key end

     0   :  { %vm66_vm0 = vcmask 261120   ;;  %v3116_v34 = vmov 0.0   ;;  %vm3117_vm1 = vmmov 0   ;;  %s3118_s24 = smov 80   ;;  %s3119_s25 = smov 96   ;;  %vm205_vm2 = vcmask 130048   ;;  %s3703_s0 = inlined_call_operand.vmem [shape: f32[16,32], index: 0, kind: input, shape index: {}]   ;;  %s3704_s3 = inlined_call_operand.vmem [shape: f32[2,32,96], index: 3, kind: input, shape index: {}]   ;;  %s3705_s1 = inlined_call_operand.vmem [shape: f32[1,32], index: 1, kind: input, shape index: {}]   ;;  %s3706_s2 = inlined_call_operand.vmem [shape: f32[1,32], index: 2, kind: input, shape index: {}]   ;;  %s3707_s4 = inlined_call_operand.vmem [shape: f32[2,1,96], index: 4, kind: input, shape index: {}]   ;;  %s3708_s5 = inlined_call_operand.vmem [shape: f32[2,32,32], index: 5, kind: input, shape index: {}]   ;;  %s3709_s6 = inlined_call_operand.vmem [shape: f32[2,1,32], index: 6, kind: input, shape index: {}]   ;;  %s3710_s9 = inlined_call_operand.vmem [shape: f32[2,32,128], index: 9, kind: input, shape index: {}]   ;;  %s3711_s11 = inlined_call_operand.vmem [shape: f32[2,128,32], index: 11, kind: input, shape index: {}]   ;;  %s3712_s7 = inlined_call_operand.vmem [shape: f32[2,1,32], index: 7, kind: input, shape index: {}]   ;;  %s3713_s8 = inlined_call_operand.vmem [shape: f32[2,1,32], index: 8, kind: input, shape index: {}]   ;;  %s3714_s10 = inlined_call_operand.vmem [shape: f32[2,1,128], index: 10, kind: input, shape index: {}]   ;;  %s3715_s12 = inlined_call_operand.vmem [shape: f32[2,1,32], index: 12, kind: input, shape index: {}]   ;;  %s3716_s13 = inlined_call_operand.vmem [shape: f32[2,1,32], index: 13, kind: input, shape index: {}]   ;;  %s3717_s14 = inlined_call_operand.vmem [shape: f32[2,1,32], index: 14, kind: input, shape index: {}]   ;;  %s3718_s15 = inlined_call_operand.vmem [shape: f32[32,32], index: 15, kind: input, shape index: {}]   ;;  %s3719_s17 = inlined_call_operand.vmem [shape: f32[32,2], index: 17, kind: input, shape index: {}]   ;;  %s3720_s16 = inlined_call_operand.vmem [shape: f32[1,32], index: 16, kind: input, shape index: {}]   ;;  %s3721_s18 = inlined_call_operand.vmem [shape: f32[1,2], index: 18, kind: input, shape index: {}]   ;;  %s3722_s19 = inlined_call_operand.vmem [shape: f32[2,2], index: 19, kind: output, shape index: {}]  }
   0x1   :  { %3725 = sst [smem:[#allocation2_spill]] %s3703_s0  ;;  %2829 = vmatprep.subr.mxu0 %v3116_v34  ;;  %2831 = vmatprep.mubr.msk.f32.mxu0 %vm3117_vm1, %v3116_v34  ;;  %v2602_v36 = vld [vmem:[%s3707_s4] ss:$0 sm:$0xff]  ;;  %vm281_vm3 = vcmask 64512   ;;  %s3121_s26 = smov 48   ;;  %vm2423_vm4 = vcmask 1040384  }
   0x2   :  { %3726 = sst [smem:[#allocation3_spill]] %s3704_s3  ;;  %s3122_s27 = smov 64   ;;  %vm2594_vm5 = vcmask 9216  }
   0x3   :  { %3727 = sst [smem:[#allocation4_spill]] %s3705_s1  ;;  %s3123_s1 = smov 16  }
   0x4   :  { %3728 = sst [smem:[#allocation5_spill]] %s3706_s2  ;;  %s3120_s2 = smov 112  }
   0x5   :  { %s3729_s20 = sld [smem:[#allocation2_spill]] }
   0x6   :  { %s3730_s23 = sld [smem:[#allocation3_spill]] }
   0x7   :  { %s3731_s30 = sld [smem:[#allocation4_spill]] }
   0x8   :  { %s3732_s3 = sld [smem:[#allocation5_spill]] }
   0xb   :  { %v62_v0 = vld [vmem:[%s3729_s20] sm:$0xff]  ;;  %v63_v1 = vld [vmem:[%s3729_s20 + $0x8] sm:$0xff] }
   0xc   :  { %v67_v2 = vsel %vm66_vm0, %v62_v0, 0.0  ;;  %v70_v3 = vsel %vm66_vm0, %v63_v1, 0.0  ;;  %v113_v14 = vld [vmem:[%s3730_s23 + $0x18] sm:$0xff]  ;;  %v112_v15 = vld [vmem:[%s3730_s23 + $0x10] sm:$0xff]  ;;  %v111_v16 = vld [vmem:[%s3730_s23 + $0x8] sm:$0xff] }
   0xd   :  { %68 = vadd.xlane.f32.xlu0 %v67_v2  ;;  %2808 = vmatprep.subr.mxu1 %v113_v14  ;;  %v110_v17 = vld [vmem:[%s3730_s23] sm:$0xff] }
   0xe   :  { %2809 = vmatpush3.msra.mxu1 %v113_v14  ;;  %v2600_v25 = vld [vmem:[%s3731_s30] ss:$0 sm:$0xff] }
   0xf   :  { %2810 = vmatprep.subr.mxu1 %v112_v15  ;;  %v2601_v27 = vld [vmem:[%s3732_s3] ss:$0 sm:$0xff] }
  0x10   :  { %2811 = vmatpush3.msra.mxu1 %v112_v15 }
  0x11   :  { %71 = vadd.xlane.f32.xlu0 %v70_v3  ;;  %2812 = vmatprep.subr.mxu1 %v111_v16 }
  0x12   :  { %2813 = vmatpush3.msra.mxu1 %v111_v16 }
  0x13   :  { %2814 = vmatprep.subr.mxu1 %v110_v17 }
  0x14   :  { %2815 = vmatpush3.msra.mxu1 %v110_v17 }
  0x15   :  { %2819 = vmatprep.subr.mxu1 %v3116_v34 }
  0x96   :  { %v69_v4 = vpop.xlane.xlu0 %68 }
  0x97   :  { %v74_v5 = vmul.f32 0.03125, %v69_v4 }
  0x99   :  { %v76_v6 = vsub.f32 %v62_v0, %v74_v5 }
  0x9a   :  { %v72_v7 = vpop.xlane.xlu0 %71 }
  0x9b   :  { %v75_v8 = vmul.f32 0.03125, %v72_v7  ;;  %v78_v9 = vmul.f32 %v76_v6, %v76_v6 }
  0x9d   :  { %v77_v10 = vsub.f32 %v63_v1, %v75_v8  ;;  %v80_v11 = vsel %vm66_vm0, %v78_v9, 0.0 }
  0x9e   :  { %81 = vadd.xlane.f32.xlu1 %v80_v11 }
  0x9f   :  { %v79_v12 = vmul.f32 %v77_v10, %v77_v10 }
  0xa1   :  { %v83_v13 = vsel %vm66_vm0, %v79_v12, 0.0 }
  0xa2   :  { %84 = vadd.xlane.f32.xlu1 %v83_v13 }
 0x127   :  { %v82_v18 = vpop.xlane.xlu1 %81 }
 0x128   :  { %v86_v19 = vmul.f32 0.03125, %v82_v18 }
 0x12a   :  { %v88_v20 = vadd.f32 1e-12, %v86_v19 }
 0x12b   :  { %v85_v21 = vpop.xlane.xlu1 %84 }
 0x12c   :  { %3054 = vrsqrt.f32 %v88_v20  ;;  %v87_v22 = vmul.f32 0.03125, %v85_v21 }
 0x12e   :  { %v89_v23 = vadd.f32 1e-12, %v87_v22 }
 0x130   :  { %3056 = vrsqrt.f32 %v89_v23 }
 0x139   :  { %v3055_v24 = vpop.eup %3054 }
 0x13a   :  { %v92_v26 = vmul.f32 %v3055_v24, %v76_v6 }
 0x13c   :  { %v100_v28 = vmul.f32 %v2600_v25, %v92_v26 }
 0x13d   :  { %v3057_v29 = vpop.eup %3056 }
 0x13e   :  { %v93_v30 = vmul.f32 %v3057_v29, %v77_v10  ;;  %v3252_v31 = vadd.f32 %v2601_v27, %v100_v28 }
 0x140   :  { %v101_v32 = vmul.f32 %v2600_v25, %v93_v30  ;;  %2816 = vmatprep.mubr.msk.f32.mxu1 %vm66_vm0, %v3252_v31 }
 0x142   :  { %v3256_v33 = vadd.f32 %v2601_v27, %v101_v32 }
 0x144   :  { %2817 = vmatmul.mubr.msk.f32.vlgmr.msra.gmra.mxu1 %vm66_vm0, %v3256_v33 }
 0x145   :  { %2821 = vmatprep.mubr.msk.f32.mxu1 %vm3117_vm1, %v3116_v34 }
 0x204   :  { %v2818_v35 = vpop.f32.mrf.mxu1 }
 0x205   :  { %v3275_v39 = vadd.f32 %v2818_v35, %v2602_v36 }
 0x206   :  { %v193_v37 = vpop.f32.mrf.mxu1 }
 0x207   :  { %v3269_v38 = vadd.f32 %v2602_v36, %v193_v37  ;;  %v879_v37 = vld [vmem:[%s3708_s5 + $0x18] sm:$0xff] }
 0x209   :  { %371 = vrot.lane.b32.xlu1 %v3269_v38, %s3118_s24  ;;  %203 = vrot.lane.b32.xlu0 %v3269_v38, %s3119_s25 }
 0x20d   :  { %369 = vrot.lane.b32.xlu1 %v3269_v38, %s3120_s2  ;;  %707 = vrot.lane.b32.xlu0 %v3275_v39, %s3118_s24 }
 0x211   :  { %541 = vrot.lane.b32.xlu1 %v3275_v39, %s3119_s25 }
 0x215   :  { %705 = vrot.lane.b32.xlu1 %v3275_v39, %s3120_s2 }
 0x27b   :  { %v372_v40 = vpop.permute.xlu1 %371  ;;  %v204_v41 = vpop.permute.xlu0 %203 }
 0x27c   :  { %2820 = vmatpush3.xpose.msk.msra.mxu1 %vm205_vm2, %v204_v41  ;;  %2830 = vmatpush3.xpose.msk.msra.mxu0 %vm205_vm2, %v372_v40  ;;  %v876_v40 = vld [vmem:[%s3708_s5] sm:$0xff] }
 0x27d   :  { %2839 = vmatprep.subr.mxu0 %v3116_v34  ;;  %2824 = vmatprep.subr.mxu1 %v3116_v34 }
 0x27f   :  { %v370_v42 = vpop.permute.xlu1 %369  ;;  %2822 = vmatmul.mubr.msk.f32.vlgmr.msra.gmra.mxu1 %vm205_vm2, %v3269_v38  ;;  %v708_v44 = vpop.permute.xlu0 %707 }
 0x280   :  { %2832 = vmatmul.mubr.msk.f32.vlgmr.msra.gmra.mxu0 %vm205_vm2, %v370_v42  ;;  %2826 = vmatprep.mubr.msk.f32.mxu1 %vm3117_vm1, %v3116_v34 }
 0x281   :  { %2841 = vmatprep.mubr.msk.f32.mxu0 %vm3117_vm1, %v3116_v34 }
 0x283   :  { %v542_v43 = vpop.permute.xlu1 %541 }
 0x284   :  { %2840 = vmatpush3.xpose.msk.msra.mxu0 %vm205_vm2, %v542_v43 }
 0x285   :  { %2849 = vmatprep.subr.mxu0 %v3116_v34 }
 0x287   :  { %2842 = vmatmul.mubr.msk.f32.vlgmr.msra.gmra.mxu0 %vm205_vm2, %v3275_v39  ;;  %v706_v45 = vpop.permute.xlu1 %705 }
 0x288   :  { %2850 = vmatpush3.xpose.msk.msra.mxu0 %vm205_vm2, %v708_v44  ;;  %2851 = vmatprep.mubr.msk.f32.mxu0 %vm3117_vm1, %v3116_v34 }
 0x289   :  { %2859 = vmatprep.subr.mxu0 %v879_v37 }
 0x28b   :  { %2852 = vmatmul.mubr.msk.f32.vlgmr.msra.gmra.mxu0 %vm205_vm2, %v706_v45 }
 0x28c   :  { %2860 = vmatpush3.msra.mxu0 %v879_v37  ;;  %v1123_v37 = vld [vmem:[%s3711_s11 + $0x38] sm:$0xff] }
 0x33f   :  { %v276_v46 = vpop.f32.mrf.mxu1 }
 0x340   :  { %v280_v47 = vmul.f32 0.25, %v276_v46  ;;  %v443_v48 = vpop.f32.mrf.mxu0 }
 0x341   :  { %v447_v49 = vmul.f32 0.25, %v443_v48  ;;  %v2823_v50 = vpop.f32.mrf.mxu1 }
 0x342   :  { %v2833_v51 = vpop.f32.mrf.mxu0  ;;  %v282_v52 = vsel %vm281_vm3, %v280_v47, -inf }
 0x343   :  { %283 = vmax.xlane.f32.xlu0 %v282_v52  ;;  %v448_v53 = vsel %vm281_vm3, %v447_v49, -inf }
 0x344   :  { %449 = vmax.xlane.f32.xlu1 %v448_v53  ;;  %v2617_v53 = vld [vmem:[%s3709_s6] ss:$0 sm:$0xff] }
 0x347   :  { %v613_v54 = vpop.f32.mrf.mxu0 }
 0x348   :  { %v617_v55 = vmul.f32 0.25, %v613_v54 }
 0x349   :  { %v2843_v56 = vpop.f32.mrf.mxu0 }
 0x34a   :  { %v618_v57 = vsel %vm281_vm3, %v617_v55, -inf }
 0x34b   :  { %619 = vmax.xlane.f32.xlu0 %v618_v57  ;;  %v779_v58 = vpop.f32.mrf.mxu0 }
 0x34c   :  { %v783_v59 = vmul.f32 0.25, %v779_v58 }
 0x34d   :  { %v2853_v60 = vpop.f32.mrf.mxu0 }
 0x34e   :  { %v784_v61 = vsel %vm281_vm3, %v783_v59, -inf }
 0x34f   :  { %785 = vmax.xlane.f32.xlu0 %v784_v61 }
 0x3cc   :  { %v284_v62 = vpop.xlane.xlu0 %283 }
 0x3cd   :  { %v285_v63 = vsub.f32 %v280_v47, %v284_v62  ;;  %v450_v0 = vpop.xlane.xlu1 %449 }
 0x3ce   :  { %v451_v1 = vsub.f32 %v447_v49, %v450_v0 }
 0x3cf   :  { %v286_v2 = vmul.f32 1.442695, %v285_v63 }
 0x3d0   :  { %v452_v3 = vmul.f32 1.442695, %v451_v1 }
 0x3d1   :  { %3058 = vpow2.f32 %v286_v2 }
 0x3d2   :  { %3060 = vpow2.f32 %v452_v3 }
 0x3d4   :  { %v620_v4 = vpop.xlane.xlu0 %619 }
 0x3d5   :  { %v621_v5 = vsub.f32 %v617_v55, %v620_v4 }
 0x3d7   :  { %v622_v6 = vmul.f32 1.442695, %v621_v5 }
 0x3d8   :  { %v786_v13 = vpop.xlane.xlu0 %785 }
 0x3d9   :  { %3062 = vpow2.f32 %v622_v6  ;;  %v787_v14 = vsub.f32 %v783_v59, %v786_v13 }
 0x3db   :  { %v788_v15 = vmul.f32 1.442695, %v787_v14 }
 0x3dd   :  { %3064 = vpow2.f32 %v788_v15 }
 0x3de   :  { %v3059_v7 = vpop.eup %3058 }
 0x3df   :  { %v3061_v8 = vpop.eup %3060  ;;  %v288_v9 = vsel %vm281_vm3, %v3059_v7, 0.0 }
 0x3e0   :  { %289 = vadd.xlane.f32.xlu0 %v288_v9  ;;  %v454_v10 = vsel %vm281_vm3, %v3061_v8, 0.0  ;;  %v1014_v9 = vld [vmem:[%s3710_s9] sm:$0xff] }
 0x3e1   :  { %455 = vadd.xlane.f32.xlu1 %v454_v10  ;;  %v1131_v10 = vld [vmem:[%s3711_s11 + $0x78] sm:$0xff] }
 0x3e6   :  { %v3063_v11 = vpop.eup %3062 }
 0x3e7   :  { %v624_v12 = vsel %vm281_vm3, %v3063_v11, 0.0 }
 0x3e8   :  { %625 = vadd.xlane.f32.xlu0 %v624_v12  ;;  %v1129_v12 = vld [vmem:[%s3711_s11 + $0x68] sm:$0xff] }
 0x3ea   :  { %v3065_v16 = vpop.eup %3064 }
 0x3eb   :  { %v790_v17 = vsel %vm281_vm3, %v3065_v16, 0.0 }
 0x3f2   :  { %459 = vrot.lane.b32.xlu1 %v3269_v38, %s3121_s26 }
 0x3f6   :  { %629 = vrot.lane.b32.xlu1 %v3275_v39, %s3122_s27 }
 0x3fe   :  { %293 = vrot.lane.b32.xlu0 %v3269_v38, %s3122_s27  ;;  %v878_v38 = vld [vmem:[%s3708_s5 + $0x10] sm:$0xff] }
 0x3ff   :  { %2861 = vmatprep.subr.mxu0 %v878_v38 }
 0x400   :  { %2862 = vmatpush3.msra.mxu0 %v878_v38  ;;  %v1122_v38 = vld [vmem:[%s3711_s11 + $0x30] sm:$0xff] }
 0x41a   :  { %791 = vadd.xlane.f32.xlu1 %v790_v17 }
 0x42b   :  { %795 = vrot.lane.b32.xlu1 %v3275_v39, %s3121_s26  ;;  %v877_v39 = vld [vmem:[%s3708_s5 + $0x8] sm:$0xff] }
 0x42c   :  { %2863 = vmatprep.subr.mxu0 %v877_v39 }
 0x42d   :  { %2864 = vmatpush3.msra.mxu0 %v877_v39  ;;  %v1121_v39 = vld [vmem:[%s3711_s11 + $0x28] sm:$0xff] }
 0x42e   :  { %2865 = vmatprep.subr.mxu0 %v876_v40 }
 0x42f   :  { %2866 = vmatpush3.msra.mxu0 %v876_v40  ;;  %v1120_v40 = vld [vmem:[%s3711_s11 + $0x20] sm:$0xff] }
 0x430   :  { %2881 = vmatprep.subr.mxu0 %v1131_v10 }
 0x469   :  { %v290_v18 = vpop.xlane.xlu0 %289 }
 0x46a   :  { %3066 = vrcp.f32 %v290_v18  ;;  %v456_v19 = vpop.xlane.xlu1 %455 }
 0x46b   :  { %3068 = vrcp.f32 %v456_v19 }
 0x46e   :  { %v460_v23 = vpop.permute.xlu1 %459 }
 0x471   :  { %v626_v20 = vpop.xlane.xlu0 %625 }
 0x472   :  { %3070 = vrcp.f32 %v626_v20  ;;  %v630_v27 = vpop.permute.xlu1 %629  ;;  %v2620_v20 = vld [vmem:[%s3712_s7] ss:$0 sm:$0xff] }
 0x475   :  { %v294_v21 = vpop.permute.xlu0 %293 }
 0x476   :  { %2825 = vmatpush3.msra.mxu1 %v294_v21 }
 0x477   :  { %v3067_v22 = vpop.eup %3066  ;;  %2834 = vmatprep.subr.mxu1 %v3116_v34 }
 0x478   :  { %v292_v24 = vmul.f32 %v3067_v22, %v3059_v7  ;;  %v3069_v25 = vpop.eup %3068  ;;  %v1016_v7 = vld [vmem:[%s3710_s9 + $0x10] sm:$0xff]  ;;  %v2621_v22 = vld [vmem:[%s3713_s8] ss:$0 sm:$0xff] }
 0x479   :  { %v458_v26 = vmul.f32 %v3069_v25, %v3061_v8  ;;  %v1015_v8 = vld [vmem:[%s3710_s9 + $0x8] sm:$0xff] }
 0x47a   :  { %2827 = vmatmul.mubr.msk.f32.vlgmr.msra.gmra.mxu1 %vm281_vm3, %v292_v24 }
 0x47b   :  { %2835 = vmatpush3.msra.mxu1 %v460_v23  ;;  %2836 = vmatprep.mubr.msk.f32.mxu1 %vm3117_vm1, %v3116_v34 }
 0x47c   :  { %2844 = vmatprep.subr.mxu1 %v3116_v34 }
 0x47e   :  { %2837 = vmatmul.mubr.msk.f32.vlgmr.msra.gmra.mxu1 %vm281_vm3, %v458_v26 }
 0x47f   :  { %v3071_v28 = vpop.eup %3070  ;;  %2845 = vmatpush3.msra.mxu1 %v630_v27  ;;  %2846 = vmatprep.mubr.msk.f32.mxu1 %vm3117_vm1, %v3116_v34 }
 0x480   :  { %v628_v29 = vmul.f32 %v3071_v28, %v3063_v11  ;;  %2854 = vmatprep.subr.mxu1 %v3116_v34  ;;  %v1130_v11 = vld [vmem:[%s3711_s11 + $0x70] sm:$0xff] }
 0x482   :  { %2847 = vmatmul.mubr.msk.f32.vlgmr.msra.gmra.mxu1 %vm281_vm3, %v628_v29  ;;  %v1128_v29 = vld [vmem:[%s3711_s11 + $0x60] sm:$0xff] }
 0x483   :  { %2856 = vmatprep.mubr.msk.f32.mxu1 %vm3117_vm1, %v3116_v34 }
 0x4a3   :  { %v792_v30 = vpop.xlane.xlu1 %791 }
 0x4a4   :  { %3072 = vrcp.f32 %v792_v30  ;;  %v1127_v30 = vld [vmem:[%s3711_s11 + $0x58] sm:$0xff] }
 0x4a7   :  { %v796_v32 = vpop.permute.xlu1 %795 }
 0x4a8   :  { %2855 = vmatpush3.msra.mxu1 %v796_v32  ;;  %v1126_v32 = vld [vmem:[%s3711_s11 + $0x50] sm:$0xff] }
 0x4b1   :  { %v3073_v35 = vpop.eup %3072 }
 0x4b2   :  { %v794_v36 = vmul.f32 %v3073_v35, %v3065_v16  ;;  %v1125_v35 = vld [vmem:[%s3711_s11 + $0x48] sm:$0xff] }
 0x4b4   :  { %2857 = vmatmul.mubr.msk.f32.vlgmr.msra.gmra.mxu1 %vm281_vm3, %v794_v36  ;;  %v1124_v36 = vld [vmem:[%s3711_s11 + $0x40] sm:$0xff] }
 0x53a   :  { %v365_v41 = vpop.f32.mrf.mxu1 }
 0x53c   :  { %v2828_v42 = vpop.f32.mrf.mxu1 }
 0x53d   :  { %v1118_v42 = vld [vmem:[%s3711_s11 + $0x10] sm:$0xff] }
 0x53e   :  { %v531_v43 = vpop.f32.mrf.mxu1 }
 0x53f   :  { %536 = vrot.lane.b32.xlu0 %v531_v43, %s3123_s1  ;;  %v1117_v43 = vld [vmem:[%s3711_s11 + $0x8] sm:$0xff] }
 0x540   :  { %v2838_v44 = vpop.f32.mrf.mxu1 }
 0x541   :  { %v1116_v44 = vld [vmem:[%s3711_s11] sm:$0xff] }
 0x542   :  { %v701_v45 = vpop.f32.mrf.mxu1 }
 0x544   :  { %v2848_v46 = vpop.f32.mrf.mxu1 }
 0x574   :  { %v867_v47 = vpop.f32.mrf.mxu1 }
 0x575   :  { %872 = vrot.lane.b32.xlu1 %v867_v47, %s3123_s1 }
 0x576   :  { %v2858_v48 = vpop.f32.mrf.mxu1 }
 0x5b1   :  { %v537_v49 = vpop.permute.xlu0 %536 }
 0x5b2   :  { %v539_v50 = vsel %vm205_vm2, %v365_v41, %v537_v49  ;;  %v1119_v41 = vld [vmem:[%s3711_s11 + $0x18] sm:$0xff] }
 0x5b3   :  { %2867 = vmatprep.mubr.msk.f32.mxu0 %vm66_vm0, %v539_v50 }
 0x5e7   :  { %v873_v51 = vpop.permute.xlu1 %872 }
 0x5e8   :  { %v875_v52 = vsel %vm205_vm2, %v701_v45, %v873_v51  ;;  %v2622_v45 = vld [vmem:[%s3714_s10] ss:$0 sm:$0xff] }
 0x5e9   :  { %2868 = vmatmul.mubr.msk.f32.vlgmr.msra.gmra.mxu0 %vm66_vm0, %v875_v52 }
 0x5ea   :  { %2882 = vmatpush3.msra.mxu0 %v1131_v10 }
 0x5eb   :  { %2883 = vmatprep.subr.mxu0 %v1130_v11 }
 0x5ec   :  { %2884 = vmatpush3.msra.mxu0 %v1130_v11 }
 0x5ed   :  { %2885 = vmatprep.subr.mxu0 %v1129_v12 }
 0x5ee   :  { %2886 = vmatpush3.msra.mxu0 %v1129_v12 }
 0x5ef   :  { %2887 = vmatprep.subr.mxu0 %v1128_v29 }
 0x5f0   :  { %2888 = vmatpush3.msra.mxu0 %v1128_v29  ;;  %v2627_v29 = vld [vmem:[%s3717_s14] ss:$0 sm:$0xff] }
 0x5f1   :  { %2889 = vmatprep.subr.mxu0 %v1127_v30 }
 0x5f2   :  { %2890 = vmatpush3.msra.mxu0 %v1127_v30 }
 0x5f3   :  { %2891 = vmatprep.subr.mxu0 %v1126_v32 }
 0x5f4   :  { %2892 = vmatpush3.msra.mxu0 %v1126_v32 }
 0x5f5   :  { %2893 = vmatprep.subr.mxu0 %v1125_v35 }
 0x5f6   :  { %2894 = vmatpush3.msra.mxu0 %v1125_v35 }
 0x5f7   :  { %2895 = vmatprep.subr.mxu0 %v1124_v36 }
 0x5f8   :  { %2896 = vmatpush3.msra.mxu0 %v1124_v36  ;;  %v2633_v36 = vld [vmem:[%s3707_s4 + $0x1] ss:$0 sm:$0xff] }
 0x5f9   :  { %2897 = vmatprep.subr.mxu0 %v1123_v37 }
 0x5fa   :  { %2898 = vmatpush3.msra.mxu0 %v1123_v37 }
 0x5fb   :  { %2899 = vmatprep.subr.mxu0 %v1122_v38 }
 0x5fc   :  { %2900 = vmatpush3.msra.mxu0 %v1122_v38 }
 0x5fd   :  { %2901 = vmatprep.subr.mxu0 %v1121_v39 }
 0x5fe   :  { %2902 = vmatpush3.msra.mxu0 %v1121_v39 }
 0x5ff   :  { %2903 = vmatprep.subr.mxu0 %v1120_v40 }
 0x600   :  { %2904 = vmatpush3.msra.mxu0 %v1120_v40 }
 0x601   :  { %2905 = vmatprep.subr.mxu0 %v1119_v41 }
 0x602   :  { %2906 = vmatpush3.msra.mxu0 %v1119_v41 }
 0x603   :  { %2907 = vmatprep.subr.mxu0 %v1118_v42 }
 0x604   :  { %2908 = vmatpush3.msra.mxu0 %v1118_v42 }
 0x605   :  { %2909 = vmatprep.subr.mxu0 %v1117_v43 }
 0x606   :  { %2910 = vmatpush3.msra.mxu0 %v1117_v43 }
 0x607   :  { %2911 = vmatprep.subr.mxu0 %v1116_v44 }
 0x608   :  { %2912 = vmatpush3.msra.mxu0 %v1116_v44 }
 0x609   :  { %2957 = vmatprep.subr.mxu0 %v3116_v34 }
 0x6a9   :  { %v2869_v54 = vpop.f32.mrf.mxu0 }
 0x6aa   :  { %v965_v55 = vadd.f32 %v2869_v54, %v2617_v53 }
 0x6ab   :  { %v959_v56 = vpop.f32.mrf.mxu0 }
 0x6ac   :  { %v960_v57 = vadd.f32 %v2617_v53, %v959_v56  ;;  %v969_v58 = vadd.f32 %v965_v55, %v3256_v33 }
 0x6ae   :  { %v975_v59 = vsel %vm66_vm0, %v969_v58, 0.0  ;;  %v968_v60 = vadd.f32 %v960_v57, %v3252_v31  ;;  %v1017_v31 = vld [vmem:[%s3710_s9 + $0x18] sm:$0xff] }
 0x6af   :  { %976 = vadd.xlane.f32.xlu1 %v975_v59  ;;  %2870 = vmatprep.subr.mxu1 %v1017_v31 }
 0x6b0   :  { %v972_v61 = vsel %vm66_vm0, %v968_v60, 0.0  ;;  %2871 = vmatpush3.msra.mxu1 %v1017_v31 }
 0x6b1   :  { %973 = vadd.xlane.f32.xlu0 %v972_v61  ;;  %2872 = vmatprep.subr.mxu1 %v1016_v7 }
 0x6b2   :  { %2873 = vmatpush3.msra.mxu1 %v1016_v7 }
 0x6b3   :  { %2874 = vmatprep.subr.mxu1 %v1015_v8 }
 0x6b4   :  { %2875 = vmatpush3.msra.mxu1 %v1015_v8 }
 0x6b5   :  { %2876 = vmatprep.subr.mxu1 %v1014_v9 }
 0x6b6   :  { %2877 = vmatpush3.msra.mxu1 %v1014_v9 }
 0x738   :  { %v977_v62 = vpop.xlane.xlu1 %976 }
 0x739   :  { %v979_v63 = vmul.f32 0.03125, %v977_v62 }
 0x73a   :  { %v974_v0 = vpop.xlane.xlu0 %973 }
 0x73b   :  { %v978_v1 = vmul.f32 0.03125, %v974_v0  ;;  %v981_v2 = vsub.f32 %v969_v58, %v979_v63 }
 0x73d   :  { %v980_v3 = vsub.f32 %v968_v60, %v978_v1  ;;  %v983_v6 = vmul.f32 %v981_v2, %v981_v2  ;;  %v2625_v60 = vld [vmem:[%s3715_s12] ss:$0 sm:$0xff] }
 0x73f   :  { %v982_v4 = vmul.f32 %v980_v3, %v980_v3  ;;  %v987_v33 = vsel %vm66_vm0, %v983_v6, 0.0 }
 0x741   :  { %v984_v5 = vsel %vm66_vm0, %v982_v4, 0.0 }
 0x742   :  { %985 = vadd.xlane.f32.xlu0 %v984_v5 }
 0x746   :  { %988 = vadd.xlane.f32.xlu0 %v987_v33 }
 0x7cb   :  { %v986_v13 = vpop.xlane.xlu0 %985 }
 0x7cc   :  { %v990_v14 = vmul.f32 0.03125, %v986_v13  ;;  %v2631_v13 = vld [vmem:[%s3730_s23 + $0x38] sm:$0xff] }
 0x7cd   :  { %2916 = vmatprep.subr.mxu1 %v2631_v13 }
 0x7ce   :  { %v992_v15 = vadd.f32 1e-12, %v990_v14  ;;  %v2630_v14 = vld [vmem:[%s3730_s23 + $0x30] sm:$0xff] }
 0x7cf   :  { %v989_v16 = vpop.xlane.xlu0 %988 }
 0x7d0   :  { %3074 = vrsqrt.f32 %v992_v15  ;;  %v991_v17 = vmul.f32 0.03125, %v989_v16  ;;  %v2629_v15 = vld [vmem:[%s3730_s23 + $0x28] sm:$0xff]  ;;  %v2628_v16 = vld [vmem:[%s3730_s23 + $0x20] sm:$0xff] }
 0x7d2   :  { %v993_v18 = vadd.f32 1e-12, %v991_v17 }
 0x7d4   :  { %3076 = vrsqrt.f32 %v993_v18 }
 0x7dd   :  { %v3075_v19 = vpop.eup %3074 }
 0x7de   :  { %v996_v21 = vmul.f32 %v3075_v19, %v980_v3 }
 0x7e0   :  { %v1004_v23 = vmul.f32 %v2620_v20, %v996_v21 }
 0x7e1   :  { %v3077_v24 = vpop.eup %3076 }
 0x7e2   :  { %v997_v25 = vmul.f32 %v3077_v24, %v981_v2  ;;  %v3387_v26 = vadd.f32 %v2621_v22, %v1004_v23  ;;  %v2626_v24 = vld [vmem:[%s3716_s13] ss:$0 sm:$0xff] }
 0x7e4   :  { %v1005_v27 = vmul.f32 %v2620_v20, %v997_v25  ;;  %2878 = vmatprep.mubr.msk.f32.mxu1 %vm66_vm0, %v3387_v26 }
 0x7e6   :  { %v3391_v28 = vadd.f32 %v2621_v22, %v1005_v27 }
 0x7e8   :  { %2879 = vmatmul.mubr.msk.f32.vlgmr.msra.gmra.mxu1 %vm66_vm0, %v3391_v28 }
 0x7e9   :  { %2917 = vmatpush3.msra.mxu1 %v2631_v13 }
 0x7ea   :  { %2918 = vmatprep.subr.mxu1 %v2630_v14 }
 0x7eb   :  { %2919 = vmatpush3.msra.mxu1 %v2630_v14 }
 0x7ec   :  { %2920 = vmatprep.subr.mxu1 %v2629_v15 }
 0x7ed   :  { %2921 = vmatpush3.msra.mxu1 %v2629_v15 }
 0x7ee   :  { %2922 = vmatprep.subr.mxu1 %v2628_v16 }
 0x7ef   :  { %2923 = vmatpush3.msra.mxu1 %v2628_v16 }
 0x7f0   :  { %2927 = vmatprep.subr.mxu1 %v3116_v34 }
 0x8a8   :  { %v2880_v46 = vpop.f32.mrf.mxu1 }
 0x8a9   :  { %v1103_v47 = vadd.f32 %v2880_v46, %v2622_v45 }
 0x8aa   :  { %v1097_v48 = vpop.f32.mrf.mxu1 }
 0x8ab   :  { %v1109_v49 = vmul.f32 0.70710677, %v1103_v47  ;;  %v1098_v50 = vadd.f32 %v2622_v45, %v1097_v48  ;;  %v1107_v57 = vmul.f32 0.5, %v1103_v47 }
 0x8ad   :  { %3078 = verf.f32 %v1109_v49  ;;  %v1108_v51 = vmul.f32 0.70710677, %v1098_v50  ;;  %v1106_v55 = vmul.f32 0.5, %v1098_v50 }
 0x8af   :  { %3080 = verf.f32 %v1108_v51 }
 0x8ba   :  { %v3079_v52 = vpop.eup %3078 }
 0x8bb   :  { %v1113_v54 = vadd.f32 1.0, %v3079_v52 }
 0x8bc   :  { %v3081_v53 = vpop.eup %3080 }
 0x8bd   :  { %v1112_v56 = vadd.f32 1.0, %v3081_v53  ;;  %v1115_v59 = vmul.f32 %v1113_v54, %v1107_v57 }
 0x8bf   :  { %v1114_v58 = vmul.f32 %v1112_v56, %v1106_v55 }
 0x8c1   :  { %2913 = vmatprep.mubr.f32.mxu0 %v1114_v58 }
 0x8c2   :  { %2914 = vmatmul.mubr.f32.vlgmr.msra.gmra.mxu0 %v1115_v59 }
 0x8c3   :  { %2959 = vmatprep.mubr.msk.f32.mxu0 %vm3117_vm1, %v3116_v34 }
 0x982   :  { %v2915_v61 = vpop.f32.mrf.mxu0 }
 0x983   :  { %v1211_v62 = vadd.f32 %v2915_v61, %v2625_v60 }
 0x984   :  { %v1205_v63 = vpop.f32.mrf.mxu0 }
 0x985   :  { %v1206_v0 = vadd.f32 %v2625_v60, %v1205_v63  ;;  %v1215_v1 = vadd.f32 %v1211_v62, %v3391_v28 }
 0x987   :  { %v1221_v2 = vsel %vm66_vm0, %v1215_v1, 0.0  ;;  %v1214_v3 = vadd.f32 %v1206_v0, %v3387_v26 }
 0x988   :  { %1222 = vadd.xlane.f32.xlu1 %v1221_v2 }
 0x989   :  { %v1218_v4 = vsel %vm66_vm0, %v1214_v3, 0.0 }
 0x98a   :  { %1219 = vadd.xlane.f32.xlu0 %v1218_v4 }
 0xa11   :  { %v1223_v5 = vpop.xlane.xlu1 %1222 }
 0xa12   :  { %v1225_v6 = vmul.f32 0.03125, %v1223_v5 }
 0xa13   :  { %v1220_v33 = vpop.xlane.xlu0 %1219 }
 0xa14   :  { %v1227_v31 = vsub.f32 %v1215_v1, %v1225_v6  ;;  %v1224_v7 = vmul.f32 0.03125, %v1220_v33 }
 0xa16   :  { %v1226_v8 = vsub.f32 %v1214_v3, %v1224_v7  ;;  %v1229_v9 = vmul.f32 %v1227_v31, %v1227_v31 }
 0xa18   :  { %v1233_v10 = vsel %vm66_vm0, %v1229_v9, 0.0  ;;  %v1228_v11 = vmul.f32 %v1226_v8, %v1226_v8 }
 0xa19   :  { %1234 = vadd.xlane.f32.xlu1 %v1233_v10 }
 0xa1a   :  { %v1230_v12 = vsel %vm66_vm0, %v1228_v11, 0.0 }
 0xa1b   :  { %1231 = vadd.xlane.f32.xlu0 %v1230_v12 }
 0xaa2   :  { %v1235_v17 = vpop.xlane.xlu1 %1234 }
 0xaa3   :  { %v1237_v18 = vmul.f32 0.03125, %v1235_v17 }
 0xaa4   :  { %v1232_v19 = vpop.xlane.xlu0 %1231 }
 0xaa5   :  { %v1239_v20 = vadd.f32 1e-12, %v1237_v18  ;;  %v1236_v21 = vmul.f32 0.03125, %v1232_v19 }
 0xaa7   :  { %3082 = vrsqrt.f32 %v1239_v20  ;;  %v1238_v22 = vadd.f32 1e-12, %v1236_v21 }
 0xaa9   :  { %3084 = vrsqrt.f32 %v1238_v22 }
 0xab4   :  { %v3083_v23 = vpop.eup %3082 }
 0xab5   :  { %v1243_v25 = vmul.f32 %v3083_v23, %v1227_v31 }
 0xab6   :  { %v3085_v26 = vpop.eup %3084 }
 0xab7   :  { %v1242_v27 = vmul.f32 %v3085_v26, %v1226_v8  ;;  %v1251_v28 = vmul.f32 %v2626_v24, %v1243_v25 }
 0xab9   :  { %v1250_v30 = vmul.f32 %v2626_v24, %v1242_v27  ;;  %v3470_v35 = vadd.f32 %v2627_v29, %v1251_v28 }
 0xabb   :  { %v3468_v32 = vadd.f32 %v2627_v29, %v1250_v30 }
 0xabd   :  { %2924 = vmatprep.mubr.msk.f32.mxu1 %vm66_vm0, %v3468_v32 }
 0xabe   :  { %2925 = vmatmul.mubr.msk.f32.vlgmr.msra.gmra.mxu1 %vm66_vm0, %v3470_v35 }
 0xabf   :  { %2929 = vmatprep.mubr.msk.f32.mxu1 %vm3117_vm1, %v3116_v34 }
 0xb7e   :  { %v2926_v37 = vpop.f32.mrf.mxu1 }
 0xb7f   :  { %v3481_v38 = vadd.f32 %v2926_v37, %v2633_v36 }
 0xb80   :  { %v1345_v39 = vpop.f32.mrf.mxu1 }
 0xb81   :  { %v1346_v40 = vadd.f32 %v2633_v36, %v1345_v39 }
 0xb83   :  { %1355 = vrot.lane.b32.xlu0 %v1346_v40, %s3119_s25 }
 0xb87   :  { %1521 = vrot.lane.b32.xlu0 %v1346_v40, %s3118_s24 }
 0xbf5   :  { %v1356_v41 = vpop.permute.xlu0 %1355 }
 0xbf6   :  { %2928 = vmatpush3.xpose.msk.msra.mxu1 %vm205_vm2, %v1356_v41 }
 0xbf7   :  { %2932 = vmatprep.subr.mxu1 %v3116_v34 }
 0xbf9   :  { %2930 = vmatmul.mubr.msk.f32.vlgmr.msra.gmra.mxu1 %vm205_vm2, %v1346_v40  ;;  %v1522_v55 = vpop.permute.xlu0 %1521 }
 0xbfa   :  { %2934 = vmatprep.mubr.msk.f32.mxu1 %vm3117_vm1, %v3116_v34 }
 0xcb9   :  { %v1427_v42 = vpop.f32.mrf.mxu1 }
 0xcba   :  { %v1431_v43 = vmul.f32 0.25, %v1427_v42 }
 0xcbb   :  { %v2931_v44 = vpop.f32.mrf.mxu1 }
 0xcbc   :  { %v1432_v45 = vsel %vm281_vm3, %v1431_v43, -inf }
 0xcbd   :  { %1433 = vmax.xlane.f32.xlu1 %v1432_v45  ;;  %v2650_v45 = vld [vmem:[%s3708_s5 + $0x30] sm:$0xff] }
 0xcce   :  { %1443 = vrot.lane.b32.xlu1 %v1346_v40, %s3122_s27 }
 0xd46   :  { %v1434_v46 = vpop.xlane.xlu1 %1433 }
 0xd47   :  { %v1435_v47 = vsub.f32 %v1431_v43, %v1434_v46  ;;  %v2649_v46 = vld [vmem:[%s3708_s5 + $0x28] sm:$0xff] }
 0xd49   :  { %v1436_v48 = vmul.f32 1.442695, %v1435_v47  ;;  %v2648_v47 = vld [vmem:[%s3708_s5 + $0x20] sm:$0xff] }
 0xd4a   :  { %v1444_v49 = vpop.permute.xlu1 %1443 }
 0xd4b   :  { %3086 = vpow2.f32 %v1436_v48  ;;  %2933 = vmatpush3.msra.mxu1 %v1444_v49 }
 0xd4c   :  { %2937 = vmatprep.subr.mxu1 %v3116_v34 }
 0xd58   :  { %v3087_v50 = vpop.eup %3086 }
 0xd59   :  { %v1438_v51 = vsel %vm281_vm3, %v3087_v50, 0.0 }
 0xd5a   :  { %1439 = vadd.xlane.f32.xlu1 %v1438_v51 }
 0xd6b   :  { %1519 = vrot.lane.b32.xlu1 %v1346_v40, %s3120_s2 }
 0xd6f   :  { %1691 = vrot.lane.b32.xlu1 %v3481_v38, %s3119_s25 }
 0xde3   :  { %v1440_v52 = vpop.xlane.xlu1 %1439 }
 0xde4   :  { %3088 = vrcp.f32 %v1440_v52 }
 0xde7   :  { %v1520_v56 = vpop.permute.xlu1 %1519 }
 0xdeb   :  { %v1692_v6 = vpop.permute.xlu1 %1691 }
 0xdf1   :  { %v3089_v53 = vpop.eup %3088 }
 0xdf2   :  { %v1442_v54 = vmul.f32 %v3089_v53, %v3087_v50 }
 0xdf4   :  { %2935 = vmatmul.mubr.msk.f32.vlgmr.msra.gmra.mxu1 %vm281_vm3, %v1442_v54  ;;  %v2653_v54 = vld [vmem:[%s3709_s6 + $0x1] ss:$0 sm:$0xff] }
 0xdf5   :  { %2938 = vmatpush3.xpose.msk.msra.mxu1 %vm205_vm2, %v1522_v55  ;;  %2939 = vmatprep.mubr.msk.f32.mxu1 %vm3117_vm1, %v3116_v34 }
 0xdf6   :  { %2942 = vmatprep.subr.mxu1 %v3116_v34 }
 0xdf8   :  { %2940 = vmatmul.mubr.msk.f32.vlgmr.msra.gmra.mxu1 %vm205_vm2, %v1520_v56 }
 0xdf9   :  { %2944 = vmatprep.mubr.msk.f32.mxu1 %vm3117_vm1, %v3116_v34 }
 0xeb4   :  { %v1515_v57 = vpop.f32.mrf.mxu1 }
 0xeb6   :  { %v2936_v58 = vpop.f32.mrf.mxu1 }
 0xeb8   :  { %v1593_v59 = vpop.f32.mrf.mxu1 }
 0xeb9   :  { %v1597_v60 = vmul.f32 0.25, %v1593_v59 }
 0xeba   :  { %v2941_v61 = vpop.f32.mrf.mxu1 }
 0xebb   :  { %v1598_v62 = vsel %vm281_vm3, %v1597_v60, -inf }
 0xebc   :  { %1599 = vmax.xlane.f32.xlu0 %v1598_v62 }
 0xed2   :  { %1609 = vrot.lane.b32.xlu0 %v1346_v40, %s3121_s26 }
 0xed6   :  { %1857 = vrot.lane.b32.xlu0 %v3481_v38, %s3118_s24 }
 0xf45   :  { %v1600_v63 = vpop.xlane.xlu0 %1599 }
 0xf46   :  { %v1601_v0 = vsub.f32 %v1597_v60, %v1600_v63 }
 0xf48   :  { %v1602_v1 = vmul.f32 1.442695, %v1601_v0 }
 0xf49   :  { %v1610_v2 = vpop.permute.xlu0 %1609 }
 0xf4a   :  { %3090 = vpow2.f32 %v1602_v1  ;;  %2943 = vmatpush3.msra.mxu1 %v1610_v2 }
 0xf4b   :  { %2947 = vmatprep.subr.mxu1 %v3116_v34 }
 0xf4d   :  { %v1858_v3 = vpop.permute.xlu0 %1857 }
 0xf4e   :  { %2958 = vmatpush3.xpose.msk.msra.mxu0 %vm205_vm2, %v1858_v3 }
 0xf57   :  { %v3091_v4 = vpop.eup %3090 }
 0xf58   :  { %v1604_v5 = vsel %vm281_vm3, %v3091_v4, 0.0 }
 0xf59   :  { %1605 = vadd.xlane.f32.xlu1 %v1604_v5 }
 0xf6a   :  { %1855 = vrot.lane.b32.xlu1 %v3481_v38, %s3120_s2 }
 0xfe2   :  { %v1606_v33 = vpop.xlane.xlu1 %1605 }
 0xfe3   :  { %3092 = vrcp.f32 %v1606_v33 }
 0xfe6   :  { %v1856_v31 = vpop.permute.xlu1 %1855 }
 0xfe7   :  { %2960 = vmatmul.mubr.msk.f32.vlgmr.msra.gmra.mxu0 %vm205_vm2, %v1856_v31  ;;  %v2662_v31 = vld [vmem:[%s3710_s9 + $0x30] sm:$0xff] }
 0xff0   :  { %v3093_v7 = vpop.eup %3092 }
 0xff1   :  { %v1608_v8 = vmul.f32 %v3093_v7, %v3091_v4  ;;  %v2661_v7 = vld [vmem:[%s3710_s9 + $0x28] sm:$0xff] }
 0xff3   :  { %2945 = vmatmul.mubr.msk.f32.vlgmr.msra.gmra.mxu1 %vm281_vm3, %v1608_v8  ;;  %v2660_v8 = vld [vmem:[%s3710_s9 + $0x20] sm:$0xff] }
 0xff4   :  { %2948 = vmatpush3.xpose.msk.msra.mxu1 %vm205_vm2, %v1692_v6  ;;  %2949 = vmatprep.mubr.msk.f32.mxu1 %vm3117_vm1, %v3116_v34 }
 0xff5   :  { %2952 = vmatprep.subr.mxu1 %v3116_v34 }
 0xff7   :  { %2950 = vmatmul.mubr.msk.f32.vlgmr.msra.gmra.mxu1 %vm205_vm2, %v3481_v38 }
 0xff8   :  { %2954 = vmatprep.mubr.msk.f32.mxu1 %vm3117_vm1, %v3116_v34 }
0x10a7   :  { %v1929_v9 = vpop.f32.mrf.mxu0 }
0x10a8   :  { %v1933_v10 = vmul.f32 0.25, %v1929_v9  ;;  %v2683_v9 = vld [vmem:[%s3711_s11 + $0xf8] sm:$0xff] }
0x10a9   :  { %v2961_v11 = vpop.f32.mrf.mxu0 }
0x10aa   :  { %v1934_v12 = vsel %vm281_vm3, %v1933_v10, -inf  ;;  %v2681_v11 = vld [vmem:[%s3711_s11 + $0xe8] sm:$0xff] }
0x10ab   :  { %1935 = vmax.xlane.f32.xlu1 %v1934_v12 }
0x10b3   :  { %v1681_v13 = vpop.f32.mrf.mxu1 }
0x10b5   :  { %v2946_v14 = vpop.f32.mrf.mxu1 }
0x10b7   :  { %v1763_v15 = vpop.f32.mrf.mxu1 }
0x10b8   :  { %v1767_v16 = vmul.f32 0.25, %v1763_v15 }
0x10b9   :  { %v2951_v17 = vpop.f32.mrf.mxu1 }
0x10ba   :  { %v1768_v18 = vsel %vm281_vm3, %v1767_v16, -inf }
0x10bb   :  { %1769 = vmax.xlane.f32.xlu0 %v1768_v18 }
0x10bc   :  { %1945 = vrot.lane.b32.xlu1 %v3481_v38, %s3121_s26 }
0x10c0   :  { %1686 = vrot.lane.b32.xlu1 %v1681_v13, %s3123_s1 }
0x1134   :  { %v1936_v19 = vpop.xlane.xlu1 %1935 }
0x1135   :  { %v1937_v20 = vsub.f32 %v1933_v10, %v1936_v19  ;;  %v2682_v10 = vld [vmem:[%s3711_s11 + $0xf0] sm:$0xff]  ;;  %v2658_v19 = vld [vmem:[%s3712_s7 + $0x1] ss:$0 sm:$0xff] }
0x1137   :  { %v1938_v21 = vmul.f32 1.442695, %v1937_v20 }
0x1138   :  { %v1946_v22 = vpop.permute.xlu1 %1945 }
0x1139   :  { %3094 = vpow2.f32 %v1938_v21  ;;  %v2659_v21 = vld [vmem:[%s3713_s8 + $0x1] ss:$0 sm:$0xff] }
0x113c   :  { %v1687_v23 = vpop.permute.xlu1 %1686 }
0x113d   :  { %v1689_v24 = vsel %vm205_vm2, %v1515_v57, %v1687_v23 }
0x113e   :  { %2975 = vmatprep.mubr.msk.f32.mxu0 %vm66_vm0, %v1689_v24 }
0x1144   :  { %v1770_v25 = vpop.xlane.xlu0 %1769 }
0x1145   :  { %v1771_v26 = vsub.f32 %v1767_v16, %v1770_v25 }
0x1146   :  { %v3095_v27 = vpop.eup %3094 }
0x1147   :  { %v1772_v28 = vmul.f32 1.442695, %v1771_v26  ;;  %v1940_v29 = vsel %vm281_vm3, %v3095_v27, 0.0 }
0x1148   :  { %1941 = vadd.xlane.f32.xlu0 %v1940_v29  ;;  %v2679_v29 = vld [vmem:[%s3711_s11 + $0xd8] sm:$0xff] }
0x1149   :  { %3096 = vpow2.f32 %v1772_v28  ;;  %v2680_v28 = vld [vmem:[%s3711_s11 + $0xe0] sm:$0xff] }
0x1156   :  { %v3097_v30 = vpop.eup %3096 }
0x1157   :  { %v1774_v36 = vsel %vm281_vm3, %v3097_v30, 0.0 }
0x1158   :  { %1775 = vadd.xlane.f32.xlu0 %v1774_v36  ;;  %v2677_v36 = vld [vmem:[%s3711_s11 + $0xc8] sm:$0xff] }
0x116e   :  { %1779 = vrot.lane.b32.xlu0 %v3481_v38, %s3122_s27  ;;  %v2651_v38 = vld [vmem:[%s3708_s5 + $0x38] sm:$0xff] }
0x116f   :  { %2967 = vmatprep.subr.mxu0 %v2651_v38 }
0x1170   :  { %2968 = vmatpush3.msra.mxu0 %v2651_v38  ;;  %v2669_v38 = vld [vmem:[%s3711_s11 + $0x88] sm:$0xff] }
0x1171   :  { %2969 = vmatprep.subr.mxu0 %v2650_v45 }
0x1172   :  { %2970 = vmatpush3.msra.mxu0 %v2650_v45  ;;  %v2668_v45 = vld [vmem:[%s3711_s11 + $0x80] sm:$0xff] }
0x1173   :  { %2971 = vmatprep.subr.mxu0 %v2649_v46 }
0x1174   :  { %2972 = vmatpush3.msra.mxu0 %v2649_v46  ;;  %v2665_v46 = vld [vmem:[%s3714_s10 + $0x1] ss:$0 sm:$0xff] }
0x1175   :  { %2973 = vmatprep.subr.mxu0 %v2648_v47 }
0x1176   :  { %2974 = vmatpush3.msra.mxu0 %v2648_v47 }
0x1177   :  { %2989 = vmatprep.subr.mxu0 %v2683_v9 }
0x11d1   :  { %v1942_v37 = vpop.xlane.xlu0 %1941 }
0x11e1   :  { %v1776_v39 = vpop.xlane.xlu0 %1775 }
0x11e2   :  { %3098 = vrcp.f32 %v1776_v39  ;;  %v2675_v39 = vld [vmem:[%s3711_s11 + $0xb8] sm:$0xff] }
0x11e3   :  { %3100 = vrcp.f32 %v1942_v37  ;;  %v2676_v37 = vld [vmem:[%s3711_s11 + $0xc0] sm:$0xff] }
0x11e5   :  { %v1780_v40 = vpop.permute.xlu0 %1779 }
0x11e6   :  { %2953 = vmatpush3.msra.mxu1 %v1780_v40  ;;  %v2674_v40 = vld [vmem:[%s3711_s11 + $0xb0] sm:$0xff] }
0x11e7   :  { %2962 = vmatprep.subr.mxu1 %v3116_v34 }
0x11ef   :  { %v3099_v41 = vpop.eup %3098 }
0x11f0   :  { %v1778_v42 = vmul.f32 %v3099_v41, %v3097_v30  ;;  %v3101_v43 = vpop.eup %3100  ;;  %v2678_v30 = vld [vmem:[%s3711_s11 + $0xd0] sm:$0xff]  ;;  %v2673_v41 = vld [vmem:[%s3711_s11 + $0xa8] sm:$0xff] }
0x11f1   :  { %v1944_v44 = vmul.f32 %v3101_v43, %v3095_v27  ;;  %v2671_v43 = vld [vmem:[%s3711_s11 + $0x98] sm:$0xff] }
0x11f2   :  { %2955 = vmatmul.mubr.msk.f32.vlgmr.msra.gmra.mxu1 %vm281_vm3, %v1778_v42  ;;  %v2672_v42 = vld [vmem:[%s3711_s11 + $0xa0] sm:$0xff] }
0x11f3   :  { %2963 = vmatpush3.msra.mxu1 %v1946_v22  ;;  %2964 = vmatprep.mubr.msk.f32.mxu1 %vm3117_vm1, %v3116_v34 }
0x11f6   :  { %2965 = vmatmul.mubr.msk.f32.vlgmr.msra.gmra.mxu1 %vm281_vm3, %v1944_v44  ;;  %v2670_v44 = vld [vmem:[%s3711_s11 + $0x90] sm:$0xff] }
0x12b2   :  { %v1851_v48 = vpop.f32.mrf.mxu1 }
0x12b4   :  { %v2956_v49 = vpop.f32.mrf.mxu1 }
0x12b6   :  { %v2017_v50 = vpop.f32.mrf.mxu1 }
0x12b7   :  { %2022 = vrot.lane.b32.xlu1 %v2017_v50, %s3123_s1 }
0x12b8   :  { %v2966_v51 = vpop.f32.mrf.mxu1 }
0x1329   :  { %v2023_v52 = vpop.permute.xlu1 %2022 }
0x132a   :  { %v2025_v53 = vsel %vm205_vm2, %v1851_v48, %v2023_v52 }
0x132b   :  { %2976 = vmatmul.mubr.msk.f32.vlgmr.msra.gmra.mxu0 %vm66_vm0, %v2025_v53 }
0x132c   :  { %2990 = vmatpush3.msra.mxu0 %v2683_v9 }
0x132d   :  { %2991 = vmatprep.subr.mxu0 %v2682_v10 }
0x132e   :  { %2992 = vmatpush3.msra.mxu0 %v2682_v10 }
0x132f   :  { %2993 = vmatprep.subr.mxu0 %v2681_v11 }
0x1330   :  { %2994 = vmatpush3.msra.mxu0 %v2681_v11 }
0x1331   :  { %2995 = vmatprep.subr.mxu0 %v2680_v28 }
0x1332   :  { %2996 = vmatpush3.msra.mxu0 %v2680_v28 }
0x1333   :  { %2997 = vmatprep.subr.mxu0 %v2679_v29 }
0x1334   :  { %2998 = vmatpush3.msra.mxu0 %v2679_v29 }
0x1335   :  { %2999 = vmatprep.subr.mxu0 %v2678_v30 }
0x1336   :  { %3000 = vmatpush3.msra.mxu0 %v2678_v30 }
0x1337   :  { %3001 = vmatprep.subr.mxu0 %v2677_v36 }
0x1338   :  { %3002 = vmatpush3.msra.mxu0 %v2677_v36 }
0x1339   :  { %3003 = vmatprep.subr.mxu0 %v2676_v37 }
0x133a   :  { %3004 = vmatpush3.msra.mxu0 %v2676_v37 }
0x133b   :  { %3005 = vmatprep.subr.mxu0 %v2675_v39 }
0x133c   :  { %3006 = vmatpush3.msra.mxu0 %v2675_v39 }
0x133d   :  { %3007 = vmatprep.subr.mxu0 %v2674_v40 }
0x133e   :  { %3008 = vmatpush3.msra.mxu0 %v2674_v40  ;;  %v2513_v40 = vld [vmem:[%s3719_s17 + $0x18] sm:$0xff] }
0x133f   :  { %3009 = vmatprep.subr.mxu0 %v2673_v41 }
0x1340   :  { %3010 = vmatpush3.msra.mxu0 %v2673_v41  ;;  %v2512_v41 = vld [vmem:[%s3719_s17 + $0x10] sm:$0xff] }
0x1341   :  { %3011 = vmatprep.subr.mxu0 %v2672_v42 }
0x1342   :  { %3012 = vmatpush3.msra.mxu0 %v2672_v42  ;;  %v2511_v42 = vld [vmem:[%s3719_s17 + $0x8] sm:$0xff] }
0x1343   :  { %3013 = vmatprep.subr.mxu0 %v2671_v43 }
0x1344   :  { %3014 = vmatpush3.msra.mxu0 %v2671_v43  ;;  %v2510_v43 = vld [vmem:[%s3719_s17] sm:$0xff] }
0x1345   :  { %3015 = vmatprep.subr.mxu0 %v2670_v44 }
0x1346   :  { %3016 = vmatpush3.msra.mxu0 %v2670_v44  ;;  %v2690_v44 = vld [vmem:[%s3720_s16] ss:$0 sm:$0xff] }
0x1347   :  { %3017 = vmatprep.subr.mxu0 %v2669_v38 }
0x1348   :  { %3018 = vmatpush3.msra.mxu0 %v2669_v38 }
0x1349   :  { %3019 = vmatprep.subr.mxu0 %v2668_v45 }
0x134a   :  { %3020 = vmatpush3.msra.mxu0 %v2668_v45 }
0x13eb   :  { %v2977_v55 = vpop.f32.mrf.mxu0 }
0x13ec   :  { %v2117_v56 = vadd.f32 %v2977_v55, %v2653_v54 }
0x13ed   :  { %v2111_v57 = vpop.f32.mrf.mxu0 }
0x13ee   :  { %v2112_v58 = vadd.f32 %v2653_v54, %v2111_v57  ;;  %v2121_v59 = vadd.f32 %v2117_v56, %v3470_v35 }
0x13f0   :  { %v2129_v60 = vsel %vm66_vm0, %v2121_v59, 0.0  ;;  %v2120_v61 = vadd.f32 %v2112_v58, %v3468_v32  ;;  %v2663_v32 = vld [vmem:[%s3710_s9 + $0x38] sm:$0xff] }
0x13f1   :  { %2130 = vadd.xlane.f32.xlu1 %v2129_v60  ;;  %2978 = vmatprep.subr.mxu1 %v2663_v32 }
0x13f2   :  { %v2126_v62 = vsel %vm66_vm0, %v2120_v61, 0.0  ;;  %2979 = vmatpush3.msra.mxu1 %v2663_v32 }
0x13f3   :  { %2127 = vadd.xlane.f32.xlu0 %v2126_v62  ;;  %2980 = vmatprep.subr.mxu1 %v2662_v31 }
0x13f4   :  { %2981 = vmatpush3.msra.mxu1 %v2662_v31 }
0x13f5   :  { %2982 = vmatprep.subr.mxu1 %v2661_v7 }
0x13f6   :  { %2983 = vmatpush3.msra.mxu1 %v2661_v7 }
0x13f7   :  { %2984 = vmatprep.subr.mxu1 %v2660_v8 }
0x13f8   :  { %2985 = vmatpush3.msra.mxu1 %v2660_v8 }
0x13f9   :  { %3024 = vmatprep.subr.mxu1 %v3116_v34 }
0x147a   :  { %v2131_v63 = vpop.xlane.xlu1 %2130 }
0x147b   :  { %v2133_v0 = vmul.f32 0.03125, %v2131_v63 }
0x147c   :  { %v2128_v1 = vpop.xlane.xlu0 %2127 }
0x147d   :  { %v2132_v2 = vmul.f32 0.03125, %v2128_v1  ;;  %v2135_v3 = vsub.f32 %v2121_v59, %v2133_v0 }
0x147f   :  { %v2134_v4 = vsub.f32 %v2120_v61, %v2132_v2  ;;  %v2137_v33 = vmul.f32 %v2135_v3, %v2135_v3  ;;  %v2685_v61 = vld [vmem:[%s3715_s12 + $0x1] ss:$0 sm:$0xff] }
0x1481   :  { %v2136_v5 = vmul.f32 %v2134_v4, %v2134_v4  ;;  %v2141_v35 = vsel %vm66_vm0, %v2137_v33, 0.0 }
0x1483   :  { %v2138_v6 = vsel %vm66_vm0, %v2136_v5, 0.0 }
0x1484   :  { %2139 = vadd.xlane.f32.xlu0 %v2138_v6 }
0x1488   :  { %2142 = vadd.xlane.f32.xlu0 %v2141_v35 }
0x150d   :  { %v2140_v12 = vpop.xlane.xlu0 %2139 }
0x150e   :  { %v2144_v13 = vmul.f32 0.03125, %v2140_v12  ;;  %v2428_v12 = vld [vmem:[%s3718_s15 + $0x18] sm:$0xff] }
0x1510   :  { %v2146_v14 = vadd.f32 1e-12, %v2144_v13  ;;  %v2427_v13 = vld [vmem:[%s3718_s15 + $0x10] sm:$0xff] }
0x1511   :  { %v2143_v15 = vpop.xlane.xlu0 %2142 }
0x1512   :  { %3102 = vrsqrt.f32 %v2146_v14  ;;  %v2145_v16 = vmul.f32 0.03125, %v2143_v15  ;;  %v2426_v14 = vld [vmem:[%s3718_s15 + $0x8] sm:$0xff]  ;;  %v2425_v15 = vld [vmem:[%s3718_s15] sm:$0xff] }
0x1514   :  { %v2147_v17 = vadd.f32 1e-12, %v2145_v16 }
0x1516   :  { %3104 = vrsqrt.f32 %v2147_v17 }
0x151f   :  { %v3103_v18 = vpop.eup %3102 }
0x1520   :  { %v2150_v20 = vmul.f32 %v3103_v18, %v2134_v4 }
0x1522   :  { %v2158_v22 = vmul.f32 %v2658_v19, %v2150_v20 }
0x1523   :  { %v3105_v23 = vpop.eup %3104 }
0x1524   :  { %v2151_v24 = vmul.f32 %v3105_v23, %v2135_v3  ;;  %v3592_v25 = vadd.f32 %v2659_v21, %v2158_v22  ;;  %v2688_v23 = vld [vmem:[%s3716_s13 + $0x1] ss:$0 sm:$0xff] }
0x1526   :  { %v2159_v26 = vmul.f32 %v2658_v19, %v2151_v24  ;;  %2986 = vmatprep.mubr.msk.f32.mxu1 %vm66_vm0, %v3592_v25 }
0x1528   :  { %v3596_v27 = vadd.f32 %v2659_v21, %v2159_v26  ;;  %v2689_v26 = vld [vmem:[%s3717_s14 + $0x1] ss:$0 sm:$0xff] }
0x152a   :  { %2987 = vmatmul.mubr.msk.f32.vlgmr.msra.gmra.mxu1 %vm66_vm0, %v3596_v27 }
0x152b   :  { %3032 = vmatprep.mubr.msk.f32.mxu1 %vm3117_vm1, %v3116_v34  ;;  %3025 = vmatpush3.msra.mxu1 %v2428_v12 }
0x152c   :  { %3026 = vmatprep.subr.mxu1 %v3116_v34 }
0x152d   :  { %3027 = vmatpush3.msra.mxu1 %v2427_v13 }
0x152e   :  { %3028 = vmatprep.subr.mxu1 %v3116_v34 }
0x152f   :  { %3029 = vmatpush3.msra.mxu1 %v2426_v14 }
0x1530   :  { %3030 = vmatprep.subr.mxu1 %v3116_v34 }
0x1531   :  { %3031 = vmatpush3.msra.mxu1 %v2425_v15 }
0x1532   :  { %3035 = vmatprep.subr.mxu1 %v3116_v34 }
0x15ea   :  { %v2988_v47 = vpop.f32.mrf.mxu1 }
0x15eb   :  { %v2259_v48 = vadd.f32 %v2988_v47, %v2665_v46 }
0x15ec   :  { %v2253_v49 = vpop.f32.mrf.mxu1 }
0x15ed   :  { %v2265_v50 = vmul.f32 0.70710677, %v2259_v48  ;;  %v2254_v51 = vadd.f32 %v2665_v46, %v2253_v49  ;;  %v2263_v58 = vmul.f32 0.5, %v2259_v48  ;;  %v2692_v48 = vld [vmem:[%s3721_s18] ss:$0 sm:$0xff] }
0x15ef   :  { %3106 = verf.f32 %v2265_v50  ;;  %v2264_v52 = vmul.f32 0.70710677, %v2254_v51  ;;  %v2262_v56 = vmul.f32 0.5, %v2254_v51 }
0x15f1   :  { %3108 = verf.f32 %v2264_v52 }
0x15fc   :  { %v3107_v53 = vpop.eup %3106 }
0x15fd   :  { %v2269_v55 = vadd.f32 1.0, %v3107_v53 }
0x15fe   :  { %v3109_v54 = vpop.eup %3108 }
0x15ff   :  { %v2268_v57 = vadd.f32 1.0, %v3109_v54  ;;  %v2271_v60 = vmul.f32 %v2269_v55, %v2263_v58 }
0x1601   :  { %v2270_v59 = vmul.f32 %v2268_v57, %v2262_v56 }
0x1603   :  { %3021 = vmatprep.mubr.f32.mxu0 %v2270_v59 }
0x1604   :  { %3022 = vmatmul.mubr.f32.vlgmr.msra.gmra.mxu0 %v2271_v60 }
0x16c4   :  { %v3023_v62 = vpop.f32.mrf.mxu0 }
0x16c5   :  { %v2369_v63 = vadd.f32 %v3023_v62, %v2685_v61 }
0x16c6   :  { %v2363_v0 = vpop.f32.mrf.mxu0 }
0x16c7   :  { %v2364_v1 = vadd.f32 %v2685_v61, %v2363_v0  ;;  %v2373_v2 = vadd.f32 %v2369_v63, %v3596_v27 }
0x16c9   :  { %v2381_v3 = vsel %vm66_vm0, %v2373_v2, 0.0  ;;  %v2372_v4 = vadd.f32 %v2364_v1, %v3592_v25 }
0x16ca   :  { %2382 = vadd.xlane.f32.xlu0 %v2381_v3 }
0x16cb   :  { %v2378_v5 = vsel %vm66_vm0, %v2372_v4, 0.0 }
0x16cc   :  { %2379 = vadd.xlane.f32.xlu1 %v2378_v5 }
0x1753   :  { %v2383_v6 = vpop.xlane.xlu0 %2382 }
0x1754   :  { %v2385_v33 = vmul.f32 0.03125, %v2383_v6 }
0x1755   :  { %v2380_v35 = vpop.xlane.xlu1 %2379 }
0x1756   :  { %v2387_v32 = vsub.f32 %v2373_v2, %v2385_v33  ;;  %v2384_v31 = vmul.f32 0.03125, %v2380_v35 }
0x1758   :  { %v2386_v7 = vsub.f32 %v2372_v4, %v2384_v31  ;;  %v2389_v8 = vmul.f32 %v2387_v32, %v2387_v32 }
0x175a   :  { %v2393_v9 = vsel %vm66_vm0, %v2389_v8, 0.0  ;;  %v2388_v10 = vmul.f32 %v2386_v7, %v2386_v7 }
0x175b   :  { %2394 = vadd.xlane.f32.xlu0 %v2393_v9 }
0x175c   :  { %v2390_v11 = vsel %vm66_vm0, %v2388_v10, 0.0 }
0x175d   :  { %2391 = vadd.xlane.f32.xlu1 %v2390_v11 }
0x17e4   :  { %v2395_v16 = vpop.xlane.xlu0 %2394 }
0x17e5   :  { %v2397_v17 = vmul.f32 0.03125, %v2395_v16 }
0x17e6   :  { %v2392_v18 = vpop.xlane.xlu1 %2391 }
0x17e7   :  { %v2399_v19 = vadd.f32 1e-12, %v2397_v17  ;;  %v2396_v20 = vmul.f32 0.03125, %v2392_v18 }
0x17e9   :  { %3110 = vrsqrt.f32 %v2399_v19  ;;  %v2398_v21 = vadd.f32 1e-12, %v2396_v20 }
0x17eb   :  { %3112 = vrsqrt.f32 %v2398_v21 }
0x17f6   :  { %v3111_v22 = vpop.eup %3110 }
0x17f7   :  { %v2403_v24 = vmul.f32 %v3111_v22, %v2387_v32 }
0x17f8   :  { %v3113_v25 = vpop.eup %3112 }
0x17f9   :  { %v2402_v27 = vmul.f32 %v3113_v25, %v2386_v7  ;;  %v2411_v28 = vmul.f32 %v2688_v23, %v2403_v24 }
0x17fb   :  { %v2410_v29 = vmul.f32 %v2688_v23, %v2402_v27  ;;  %v2419_v30 = vadd.f32 %v2689_v26, %v2411_v28 }
0x17fd   :  { %v2418_v36 = vadd.f32 %v2689_v26, %v2410_v29  ;;  %v2421_v37 = vrot.slane %v2419_v30, 7 }
0x17ff   :  { %v2424_v39 = vsel %vm2423_vm4, %v2418_v36, %v2421_v37 }
0x1800   :  { %3033 = vmatmul.mubr.msk.f32.vlgmr.msra.gmra.mxu1 %vm66_vm0, %v2424_v39 }
0x1801   :  { %3043 = vmatprep.mubr.msk.f32.mxu1 %vm3117_vm1, %v3116_v34  ;;  %3036 = vmatpush3.msra.mxu1 %v2513_v40 }
0x1802   :  { %3037 = vmatprep.subr.mxu1 %v3116_v34 }
0x1803   :  { %3038 = vmatpush3.msra.mxu1 %v2512_v41 }
0x1804   :  { %3039 = vmatprep.subr.mxu1 %v3116_v34 }
0x1805   :  { %3040 = vmatpush3.msra.mxu1 %v2511_v42 }
0x1806   :  { %3041 = vmatprep.subr.mxu1 %v3116_v34 }
0x1807   :  { %3042 = vmatpush3.msra.mxu1 %v2510_v43 }
0x18c0   :  { %v2505_v38 = vpop.f32.mrf.mxu1 }
0x18c1   :  { %v2506_v45 = vadd.f32 %v2690_v44, %v2505_v38 }
0x18c2   :  { %v3034_v46 = vpop.f32.mrf.mxu1 }
0x18c3   :  { %3114 = vtanh.f32 %v2506_v45 }
0x18d0   :  { %v3115_v47 = vpop.eup %3114 }
0x18d1   :  { %3044 = vmatmul.mubr.msk.f32.vlgmr.msra.gmra.mxu1 %vm66_vm0, %v3115_v47 }
0x1991   :  { %v2590_v49 = vpop.f32.mrf.mxu1 }
0x1992   :  { %v2591_v50 = vadd.f32 %v2692_v48, %v2590_v49 }
0x1993   :  { %v3045_v34 = vpop.f32.mrf.mxu1 }
0x1994   :  { %2595 = vst.msk [vmem:[%s3722_s19] sm:$0x3] %vm2594_vm5, %v2591_v50 }

</bundles_post_ra>
